<compile_context>
chip_gen: v5e
topology: v5e:2x2
jax: 0.10.0
libtpu: 0.0.40
codegen_flags: <defaults>
</compile_context>

<pallas_src>
import jax
import jax.numpy as jnp
from jax.experimental import pallas as pl
from jax.experimental.pallas import tpu as pltpu

VMEM = pl.BlockSpec(memory_space=pltpu.MemorySpace.VMEM)
F32 = jnp.float32


# ---------------------------------------------------------------------------
# Fused forward kernel
# ---------------------------------------------------------------------------
def gat_forward_kernel(
    # graph data
    t_oh_ref, xb_ref, eattr_ref, src_oh_ref, tgt_oh_ref, tgt_oh_t_ref, pool_ref,
    # node-embedding params
    emb_t_ref, wb_ref, bb_ref,
    # conv1 / conv2 / conv3 params: (wlr, blr, we, att, bias) each
    w1_ref, b1_ref, e1_ref, a1_ref, c1_ref,
    w2_ref, b2_ref, e2_ref, a2_ref, c2_ref,
    w3_ref, b3_ref, e3_ref, a3_ref, c3_ref,
    out_ref,
):
    src_oh = src_oh_ref[...].astype(F32)       # [Etot, N] one-hot(src)
    tgt_oh = tgt_oh_ref[...].astype(F32)       # [Etot, N] one-hot(tgt)
    tgt_oh_t = tgt_oh_t_ref[...].astype(F32)   # [N, Etot] pre-transposed scatter matrix
    e_attr = eattr_ref[...]                    # [Etot, 64] f32 edge features

    # x = emb_t[x[:,0]] + Linear(1,64)(x[:,1])
    x = jnp.dot(t_oh_ref[...].astype(F32), emb_t_ref[...].astype(F32),
                preferred_element_type=F32)
    x = x + xb_ref[...] * wb_ref[...].astype(F32) + bb_ref[...].astype(F32)

    def gatv2(x, wlr_ref, blr_ref, we_ref, att_ref, bias_ref, apply_elu):
        dout = att_ref.shape[1]
        # fused lin_l || lin_r: one MXU pass over x, full output width (2*dout)
        xlr = jnp.dot(x, wlr_ref[...].astype(F32), preferred_element_type=F32)
        xlr = xlr + blr_ref[...].astype(F32)
        xl = xlr[:, :dout]
        xr = xlr[:, dout:]
        ef = jnp.dot(e_attr, we_ref[...].astype(F32), preferred_element_type=F32)

        s = jnp.dot(src_oh, xl, preferred_element_type=F32)    # x_l[src(e)]  [Etot, dout]
        t = jnp.dot(tgt_oh, xr, preferred_element_type=F32)    # x_r[tgt(e)]  [Etot, dout]

        h = s + t + ef
        h = jnp.where(h > 0, h, 0.2 * h)                        # LeakyReLU(0.2)
        # attention logit: VPU multiply + lane reduction (avoids 1-wide MXU output)
        a = jnp.sum(h * att_ref[...].astype(F32), axis=-1, keepdims=True)   # [Etot, 1]

        # ---- segment softmax over incoming edges of each target, per-edge form ----
        neg = jnp.float32(-1e30)
        m_row = jnp.max(jnp.where(tgt_oh > 0.5, a, neg), axis=0, keepdims=True)   # [1, N]
        m_e = jnp.sum(tgt_oh * m_row, axis=-1, keepdims=True)   # max gathered per edge [Etot,1]
        p_e = jnp.exp(a - m_e)                                   # [Etot, 1]  (O(Etot) EUP work)
        denom_row = jnp.sum(tgt_oh * p_e, axis=0, keepdims=True) + 1e-16           # [1, N]
        denom_e = jnp.sum(tgt_oh * denom_row, axis=-1, keepdims=True)              # [Etot, 1]
        alpha_e = p_e / denom_e                                  # [Etot, 1]

        # scatter-add as a standard MXU matmul against the pre-transposed one-hot
        out = jnp.dot(tgt_oh_t, alpha_e * s, preferred_element_type=F32)           # [N, dout]
        out = out + bias_ref[...].astype(F32)
        if apply_elu:
            out = jnp.where(out > 0, out, jnp.exp(jnp.minimum(out, 0.0)) - 1.0)
        return out

    h1 = gatv2(x, w1_ref, b1_ref, e1_ref, a1_ref, c1_ref, True)
    h2 = gatv2(h1, w2_ref, b2_ref, e2_ref, a2_ref, c2_ref, True)
    h3 = gatv2(h2, w3_ref, b3_ref, e3_ref, a3_ref, c3_ref, False)

    # per-graph mean pool as a matmul with normalized segment weights
    out_ref[...] = jnp.dot(pool_ref[...], h3, preferred_element_type=F32)


# ---------------------------------------------------------------------------
# Wrapper
# ---------------------------------------------------------------------------
def gat_forward(t_oh, x_b, e_attr, src_oh, tgt_oh, tgt_oh_t, pool_mat,
                emb_t, wb, bb, p1, p2, p3):
    args = [t_oh, x_b, e_attr, src_oh, tgt_oh, tgt_oh_t, pool_mat, emb_t, wb, bb]
    for p in (p1, p2, p3):
        args += [p["wlr"], p["blr"], p["we"], p["att"], p["bias"]]
    g = pool_mat.shape[0]
    dout = p3["att"].shape[1]
    return pl.pallas_call(
        gat_forward_kernel,
        out_shape=jax.ShapeDtypeStruct((g, dout), jnp.float32),
        in_specs=[VMEM] * len(args),
        out_specs=VMEM,
    )(*args)


# ---------------------------------------------------------------------------
# Parameter init (bf16 storage, fused lin_l||lin_r)
# ---------------------------------------------------------------------------
def init_gatv2_params(key, din, dout, edge_dim=64):
    ks = jax.random.split(key, 6)
    wl = 0.1 * jax.random.normal(ks[0], (din, dout), jnp.float32)
    wr = 0.1 * jax.random.normal(ks[1], (din, dout), jnp.float32)
    bl = 0.05 * jax.random.normal(ks[2], (1, dout), jnp.float32)
    br = 0.05 * jax.random.normal(ks[3], (1, dout), jnp.float32)
    return dict(
        wlr=jnp.concatenate([wl, wr], axis=1).astype(jnp.bfloat16),
        blr=jnp.concatenate([bl, br], axis=1).astype(jnp.bfloat16),
        we=(0.1 * jax.random.normal(ks[4], (edge_dim, dout), jnp.float32)).astype(jnp.bfloat16),
        att=(0.1 * jax.random.normal(ks[5], (1, dout), jnp.float32)).astype(jnp.bfloat16),
        bias=jnp.zeros((1, dout), jnp.bfloat16),
    )


# ---------------------------------------------------------------------------
# Pure-JAX reference (sparse form, same bf16-rounded params) for correctness check
# ---------------------------------------------------------------------------
def gatv2_ref(x, e_attr, src, tgt, p, apply_elu):
    n = x.shape[0]
    dout = p["att"].shape[1]
    xlr = x @ p["wlr"] + p["blr"]
    xl, xr = xlr[:, :dout], xlr[:, dout:]
    ef = e_attr @ p["we"]
    h = xl[src] + xr[tgt] + ef
    h = jnp.where(h > 0, h, 0.2 * h)
    a = jnp.sum(h * p["att"], axis=-1)                               # [Etot]
    m = jnp.full((n,), -1e30, jnp.float32).at[tgt].max(a)
    pe = jnp.exp(a - m[tgt])
    denom = jnp.zeros((n,), jnp.float32).at[tgt].add(pe) + 1e-16
    alpha = pe / denom[tgt]
    out = jnp.zeros((n, dout), jnp.float32).at[tgt].add(alpha[:, None] * xl[src])
    out = out + p["bias"]
    if apply_elu:
        out = jnp.where(out > 0, out, jnp.exp(jnp.minimum(out, 0.0)) - 1.0)
    return out


# ---------------------------------------------------------------------------
if __name__ == "__main__":
    key = jax.random.PRNGKey(0)
    k_emb, k_b, k1, k2, k3, k_x, k_xb, k_ea = jax.random.split(key, 8)

    NUM_TYPES, D_EMB = 60, 64
    N = 10                                  # nodes (2 graphs x 5 nodes)
    ptr = jnp.array([0, 5, 10], dtype=jnp.int32)
    G = ptr.shape[0] - 1

    # two 5-node graphs, 7 directed edges each, no pre-existing self-loops
    src_base = jnp.array([0, 1, 2, 3, 4, 1, 2], dtype=jnp.int32)
    tgt_base = jnp.array([1, 2, 3, 4, 0, 0, 1], dtype=jnp.int32)
    src = jnp.concatenate([src_base, src_base + 5])
    tgt = jnp.concatenate([tgt_base, tgt_base + 5])
    E = int(src.shape[0])

    # data.x[:,0] -> node type id, data.x[:,1] -> scalar; data.edge_attr -> edge type id
    x_type = jax.random.randint(k_x, (N,), 0, NUM_TYPES)
    x_b = jax.random.randint(k_xb, (N, 1), 0, 8).astype(jnp.float32)
    edge_attr = jax.random.randint(k_ea, (E,), 0, NUM_TYPES)

    # ---- parameters (bf16 storage; reference uses the same bf16-rounded values in f32) ----
    emb_t_bf = (0.1 * jax.random.normal(k_emb, (NUM_TYPES, D_EMB), jnp.float32)).astype(jnp.bfloat16)
    wb_bf = (0.1 * jax.random.normal(k_b, (1, D_EMB), jnp.float32)).astype(jnp.bfloat16)
    bb_bf = jnp.zeros((1, D_EMB), jnp.bfloat16)
    p1 = init_gatv2_params(k1, 64, 128)
    p2 = init_gatv2_params(k2, 128, 128)
    p3 = init_gatv2_params(k3, 128, 256)

    emb_t = emb_t_bf.astype(jnp.float32)
    wb, bb = wb_bf.astype(jnp.float32), bb_bf.astype(jnp.float32)
    p1f = {k: v.astype(jnp.float32) for k, v in p1.items()}
    p2f = {k: v.astype(jnp.float32) for k, v in p2.items()}
    p3f = {k: v.astype(jnp.float32) for k, v in p3.items()}

    # ---- glue: graph structure -> dense one-hot / pooling matrices ----
    e_emb = emb_t[edge_attr]                                     # emb_t(data.edge_attr)
    # self-loop edge attrs = scatter-mean of incoming edge attrs (fill_value='mean')
    sums = jnp.zeros((N, D_EMB), jnp.float32).at[tgt].add(e_emb)
    cnt = jnp.zeros((N, 1), jnp.float32).at[tgt].add(1.0)
    loop_attr = sums / jnp.maximum(cnt, 1.0)
    e_attr_full = jnp.concatenate([e_emb, loop_attr], axis=0)    # [E+N, 64]
    src_full = jnp.concatenate([src, jnp.arange(N, dtype=jnp.int32)])
    tgt_full = jnp.concatenate([tgt, jnp.arange(N, dtype=jnp.int32)])
    src_oh = jax.nn.one_hot(src_full, N, dtype=jnp.bfloat16)     # [E+N, N]  (0/1 exact in bf16)
    tgt_oh = jax.nn.one_hot(tgt_full, N, dtype=jnp.bfloat16)     # [E+N, N]
    tgt_oh_t = tgt_oh.T                                          # [N, E+N] pre-transposed scatter
    t_oh = jax.nn.one_hot(x_type, NUM_TYPES, dtype=jnp.bfloat16)

    node_ids = jnp.arange(N)
    seg = ((node_ids[None, :] >= ptr[:-1, None]) & (node_ids[None, :] < ptr[1:, None]))
    pool_mat = seg.astype(jnp.float32)
    pool_mat = pool_mat / jnp.sum(pool_mat, axis=1, keepdims=True)   # [G, N] mean weights

    # ---- forward pass: single fused Pallas kernel ----
    out = gat_forward(t_oh, x_b, e_attr_full, src_oh, tgt_oh, tgt_oh_t, pool_mat,
                      emb_t_bf, wb_bf, bb_bf, p1, p2, p3)        # [G, 256]
    out = jax.block_until_ready(out)

    # ---- reference check ----
    x0_ref = emb_t[x_type] + (x_b * wb + bb)
    r1 = gatv2_ref(x0_ref, e_attr_full, src_full, tgt_full, p1f, True)
    r2 = gatv2_ref(r1, e_attr_full, src_full, tgt_full, p2f, True)
    r3 = gatv2_ref(r2, e_attr_full, src_full, tgt_full, p3f, False)
    out_ref = pool_mat @ r3

    assert out.shape == (G, 256), out.shape
    assert jnp.allclose(out, out_ref, rtol=1e-4, atol=1e-4), (
        float(jnp.max(jnp.abs(out - out_ref))))
    print("KERNEL_OK")
</pallas_src>

<mosaic_0001>
module attributes {stable_mosaic.version = 11 : i64} {
  func.func @gat_forward_kernel(%arg0: memref<10x60xbf16, #tpu.memory_space<vmem>>, %arg1: memref<10x1xf32, #tpu.memory_space<vmem>>, %arg2: memref<24x64xf32, #tpu.memory_space<vmem>>, %arg3: memref<24x10xbf16, #tpu.memory_space<vmem>>, %arg4: memref<24x10xbf16, #tpu.memory_space<vmem>>, %arg5: memref<10x24xbf16, #tpu.memory_space<vmem>>, %arg6: memref<2x10xf32, #tpu.memory_space<vmem>>, %arg7: memref<60x64xbf16, #tpu.memory_space<vmem>>, %arg8: memref<1x64xbf16, #tpu.memory_space<vmem>>, %arg9: memref<1x64xbf16, #tpu.memory_space<vmem>>, %arg10: memref<64x256xbf16, #tpu.memory_space<vmem>>, %arg11: memref<1x256xbf16, #tpu.memory_space<vmem>>, %arg12: memref<64x128xbf16, #tpu.memory_space<vmem>>, %arg13: memref<1x128xbf16, #tpu.memory_space<vmem>>, %arg14: memref<1x128xbf16, #tpu.memory_space<vmem>>, %arg15: memref<128x256xbf16, #tpu.memory_space<vmem>>, %arg16: memref<1x256xbf16, #tpu.memory_space<vmem>>, %arg17: memref<64x128xbf16, #tpu.memory_space<vmem>>, %arg18: memref<1x128xbf16, #tpu.memory_space<vmem>>, %arg19: memref<1x128xbf16, #tpu.memory_space<vmem>>, %arg20: memref<128x512xbf16, #tpu.memory_space<vmem>>, %arg21: memref<1x512xbf16, #tpu.memory_space<vmem>>, %arg22: memref<64x256xbf16, #tpu.memory_space<vmem>>, %arg23: memref<1x256xbf16, #tpu.memory_space<vmem>>, %arg24: memref<1x256xbf16, #tpu.memory_space<vmem>>, %arg25: memref<2x256xf32, #tpu.memory_space<vmem>>) attributes {dimension_semantics = [], scalar_prefetch = 0 : i64, scratch_operands = 0 : i64, tpu.core_type = #tpu.core_type<tc>} {
    %c0 = arith.constant 0 : index
    %c0_0 = arith.constant 0 : index
    %0 = vector.load %arg3[%c0, %c0_0] : memref<24x10xbf16, #tpu.memory_space<vmem>>, vector<24x10xbf16>
    %1 = arith.extf %0 : vector<24x10xbf16> to vector<24x10xf32>
    %c0_1 = arith.constant 0 : index
    %c0_2 = arith.constant 0 : index
    %2 = vector.load %arg4[%c0_1, %c0_2] : memref<24x10xbf16, #tpu.memory_space<vmem>>, vector<24x10xbf16>
    %3 = arith.extf %2 : vector<24x10xbf16> to vector<24x10xf32>
    %c0_3 = arith.constant 0 : index
    %c0_4 = arith.constant 0 : index
    %4 = vector.load %arg5[%c0_3, %c0_4] : memref<10x24xbf16, #tpu.memory_space<vmem>>, vector<10x24xbf16>
    %5 = arith.extf %4 : vector<10x24xbf16> to vector<10x24xf32>
    %c0_5 = arith.constant 0 : index
    %c0_6 = arith.constant 0 : index
    %6 = vector.load %arg2[%c0_5, %c0_6] : memref<24x64xf32, #tpu.memory_space<vmem>>, vector<24x64xf32>
    %c0_7 = arith.constant 0 : index
    %c0_8 = arith.constant 0 : index
    %7 = vector.load %arg0[%c0_7, %c0_8] : memref<10x60xbf16, #tpu.memory_space<vmem>>, vector<10x60xbf16>
    %8 = arith.extf %7 : vector<10x60xbf16> to vector<10x60xf32>
    %c0_9 = arith.constant 0 : index
    %c0_10 = arith.constant 0 : index
    %9 = vector.load %arg7[%c0_9, %c0_10] : memref<60x64xbf16, #tpu.memory_space<vmem>>, vector<60x64xbf16>
    %10 = arith.extf %9 : vector<60x64xbf16> to vector<60x64xf32>
    %cst = arith.constant dense<0.000000e+00> : vector<10x64xf32>
    %11 = tpu.matmul %8, %10, %cst {dimension_numbers = #tpu.dot_dimension_numbers<[1], [0], [0], [1], [0, 0, 1, 1], [], []>} : vector<10x60xf32>, vector<60x64xf32>, vector<10x64xf32> -> vector<10x64xf32>
    %c0_11 = arith.constant 0 : index
    %c0_12 = arith.constant 0 : index
    %12 = vector.load %arg1[%c0_11, %c0_12] : memref<10x1xf32, #tpu.memory_space<vmem>>, vector<10x1xf32>
    %c0_13 = arith.constant 0 : index
    %c0_14 = arith.constant 0 : index
    %13 = vector.load %arg8[%c0_13, %c0_14] : memref<1x64xbf16, #tpu.memory_space<vmem>>, vector<1x64xbf16>
    %14 = arith.extf %13 : vector<1x64xbf16> to vector<1x64xf32>
    %15 = vector.broadcast %12 : vector<10x1xf32> to vector<10x64xf32>
    %16 = vector.broadcast %14 : vector<1x64xf32> to vector<10x64xf32>
    %17 = arith.mulf %15, %16 : vector<10x64xf32>
    %18 = arith.addf %11, %17 : vector<10x64xf32>
    %c0_15 = arith.constant 0 : index
    %c0_16 = arith.constant 0 : index
    %19 = vector.load %arg9[%c0_15, %c0_16] : memref<1x64xbf16, #tpu.memory_space<vmem>>, vector<1x64xbf16>
    %20 = arith.extf %19 : vector<1x64xbf16> to vector<1x64xf32>
    %21 = vector.broadcast %20 : vector<1x64xf32> to vector<10x64xf32>
    %22 = arith.addf %18, %21 : vector<10x64xf32>
    %c0_17 = arith.constant 0 : index
    %c0_18 = arith.constant 0 : index
    %23 = vector.load %arg10[%c0_17, %c0_18] : memref<64x256xbf16, #tpu.memory_space<vmem>>, vector<64x256xbf16>
    %24 = arith.extf %23 : vector<64x256xbf16> to vector<64x256xf32>
    %cst_19 = arith.constant dense<0.000000e+00> : vector<10x256xf32>
    %25 = tpu.matmul %22, %24, %cst_19 {dimension_numbers = #tpu.dot_dimension_numbers<[1], [0], [0], [1], [0, 0, 1, 1], [], []>} : vector<10x64xf32>, vector<64x256xf32>, vector<10x256xf32> -> vector<10x256xf32>
    %c0_20 = arith.constant 0 : index
    %c0_21 = arith.constant 0 : index
    %26 = vector.load %arg11[%c0_20, %c0_21] : memref<1x256xbf16, #tpu.memory_space<vmem>>, vector<1x256xbf16>
    %27 = arith.extf %26 : vector<1x256xbf16> to vector<1x256xf32>
    %28 = vector.broadcast %27 : vector<1x256xf32> to vector<10x256xf32>
    %29 = arith.addf %25, %28 : vector<10x256xf32>
    %30 = vector.extract_strided_slice %29 {offsets = [0, 0], sizes = [10, 128], strides = [1, 1]} : vector<10x256xf32> to vector<10x128xf32>
    %31 = vector.extract_strided_slice %29 {offsets = [0, 128], sizes = [10, 128], strides = [1, 1]} : vector<10x256xf32> to vector<10x128xf32>
    %c0_22 = arith.constant 0 : index
    %c0_23 = arith.constant 0 : index
    %32 = vector.load %arg12[%c0_22, %c0_23] : memref<64x128xbf16, #tpu.memory_space<vmem>>, vector<64x128xbf16>
    %33 = arith.extf %32 : vector<64x128xbf16> to vector<64x128xf32>
    %cst_24 = arith.constant dense<0.000000e+00> : vector<24x128xf32>
    %34 = tpu.matmul %6, %33, %cst_24 {dimension_numbers = #tpu.dot_dimension_numbers<[1], [0], [0], [1], [0, 0, 1, 1], [], []>} : vector<24x64xf32>, vector<64x128xf32>, vector<24x128xf32> -> vector<24x128xf32>
    %cst_25 = arith.constant dense<0.000000e+00> : vector<24x128xf32>
    %35 = tpu.matmul %1, %30, %cst_25 {dimension_numbers = #tpu.dot_dimension_numbers<[1], [0], [0], [1], [0, 0, 1, 1], [], []>} : vector<24x10xf32>, vector<10x128xf32>, vector<24x128xf32> -> vector<24x128xf32>
    %cst_26 = arith.constant dense<0.000000e+00> : vector<24x128xf32>
    %36 = tpu.matmul %3, %31, %cst_26 {dimension_numbers = #tpu.dot_dimension_numbers<[1], [0], [0], [1], [0, 0, 1, 1], [], []>} : vector<24x10xf32>, vector<10x128xf32>, vector<24x128xf32> -> vector<24x128xf32>
    %37 = arith.addf %35, %36 : vector<24x128xf32>
    %38 = arith.addf %37, %34 : vector<24x128xf32>
    %cst_27 = arith.constant 0.000000e+00 : f32
    %39 = vector.broadcast %cst_27 : f32 to vector<24x128xf32>
    %40 = arith.cmpf ogt, %38, %39 : vector<24x128xf32>
    %cst_28 = arith.constant 2.000000e-01 : f32
    %41 = vector.broadcast %cst_28 : f32 to vector<24x128xf32>
    %42 = arith.mulf %41, %38 : vector<24x128xf32>
    %43 = arith.select %40, %38, %42 : vector<24x128xi1>, vector<24x128xf32>
    %c0_29 = arith.constant 0 : index
    %c0_30 = arith.constant 0 : index
    %44 = vector.load %arg13[%c0_29, %c0_30] : memref<1x128xbf16, #tpu.memory_space<vmem>>, vector<1x128xbf16>
    %45 = arith.extf %44 : vector<1x128xbf16> to vector<1x128xf32>
    %46 = vector.broadcast %45 : vector<1x128xf32> to vector<24x128xf32>
    %47 = arith.mulf %43, %46 : vector<24x128xf32>
    %cst_31 = arith.constant dense<0.000000e+00> : vector<24xf32>
    %48 = vector.multi_reduction <add>, %47, %cst_31 [1] : vector<24x128xf32> to vector<24xf32>
    %49 = vector.shape_cast %48 : vector<24xf32> to vector<24x1xf32>
    %cst_32 = arith.constant 5.000000e-01 : f32
    %50 = vector.broadcast %cst_32 : f32 to vector<24x10xf32>
    %51 = arith.cmpf ogt, %3, %50 : vector<24x10xf32>
    %cst_33 = arith.constant -1.000000e+30 : f32
    %52 = vector.shape_cast %49 : vector<24x1xf32> to vector<24x1xf32>
    %53 = vector.broadcast %52 : vector<24x1xf32> to vector<24x10xf32>
    %54 = vector.broadcast %cst_33 : f32 to vector<24x10xf32>
    %55 = arith.select %51, %53, %54 : vector<24x10xi1>, vector<24x10xf32>
    %cst_34 = arith.constant dense<0xFF800000> : vector<10xf32>
    %56 = vector.multi_reduction <maximumf>, %55, %cst_34 [0] : vector<24x10xf32> to vector<10xf32>
    %57 = vector.shape_cast %56 : vector<10xf32> to vector<1x10xf32>
    %58 = vector.broadcast %57 : vector<1x10xf32> to vector<24x10xf32>
    %59 = arith.mulf %3, %58 : vector<24x10xf32>
    %cst_35 = arith.constant dense<0.000000e+00> : vector<24xf32>
    %60 = vector.multi_reduction <add>, %59, %cst_35 [1] : vector<24x10xf32> to vector<24xf32>
    %61 = vector.shape_cast %60 : vector<24xf32> to vector<24x1xf32>
    %62 = arith.subf %49, %61 : vector<24x1xf32>
    %63 = math.exp %62 : vector<24x1xf32>
    %64 = vector.broadcast %63 : vector<24x1xf32> to vector<24x10xf32>
    %65 = arith.mulf %3, %64 : vector<24x10xf32>
    %cst_36 = arith.constant dense<0.000000e+00> : vector<10xf32>
    %66 = vector.multi_reduction <add>, %65, %cst_36 [0] : vector<24x10xf32> to vector<10xf32>
    %67 = vector.shape_cast %66 : vector<10xf32> to vector<1x10xf32>
    %cst_37 = arith.constant 1.000000e-16 : f32
    %68 = vector.broadcast %cst_37 : f32 to vector<1x10xf32>
    %69 = arith.addf %67, %68 : vector<1x10xf32>
    %70 = vector.broadcast %69 : vector<1x10xf32> to vector<24x10xf32>
    %71 = arith.mulf %3, %70 : vector<24x10xf32>
    %cst_38 = arith.constant dense<0.000000e+00> : vector<24xf32>
    %72 = vector.multi_reduction <add>, %71, %cst_38 [1] : vector<24x10xf32> to vector<24xf32>
    %73 = vector.shape_cast %72 : vector<24xf32> to vector<24x1xf32>
    %74 = arith.divf %63, %73 : vector<24x1xf32>
    %75 = vector.broadcast %74 : vector<24x1xf32> to vector<24x128xf32>
    %76 = arith.mulf %75, %35 : vector<24x128xf32>
    %cst_39 = arith.constant dense<0.000000e+00> : vector<10x128xf32>
    %77 = tpu.matmul %5, %76, %cst_39 {dimension_numbers = #tpu.dot_dimension_numbers<[1], [0], [0], [1], [0, 0, 1, 1], [], []>} : vector<10x24xf32>, vector<24x128xf32>, vector<10x128xf32> -> vector<10x128xf32>
    %c0_40 = arith.constant 0 : index
    %c0_41 = arith.constant 0 : index
    %78 = vector.load %arg14[%c0_40, %c0_41] : memref<1x128xbf16, #tpu.memory_space<vmem>>, vector<1x128xbf16>
    %79 = arith.extf %78 : vector<1x128xbf16> to vector<1x128xf32>
    %80 = vector.broadcast %79 : vector<1x128xf32> to vector<10x128xf32>
    %81 = arith.addf %77, %80 : vector<10x128xf32>
    %cst_42 = arith.constant 0.000000e+00 : f32
    %82 = vector.broadcast %cst_42 : f32 to vector<10x128xf32>
    %83 = arith.cmpf ogt, %81, %82 : vector<10x128xf32>
    %cst_43 = arith.constant 0.000000e+00 : f32
    %84 = vector.broadcast %cst_43 : f32 to vector<10x128xf32>
    %85 = arith.minimumf %81, %84 : vector<10x128xf32>
    %86 = math.exp %85 : vector<10x128xf32>
    %cst_44 = arith.constant 1.000000e+00 : f32
    %87 = vector.broadcast %cst_44 : f32 to vector<10x128xf32>
    %88 = arith.subf %86, %87 : vector<10x128xf32>
    %89 = arith.select %83, %81, %88 : vector<10x128xi1>, vector<10x128xf32>
    %c0_45 = arith.constant 0 : index
    %c0_46 = arith.constant 0 : index
    %90 = vector.load %arg15[%c0_45, %c0_46] : memref<128x256xbf16, #tpu.memory_space<vmem>>, vector<128x256xbf16>
    %91 = arith.extf %90 : vector<128x256xbf16> to vector<128x256xf32>
    %cst_47 = arith.constant dense<0.000000e+00> : vector<10x256xf32>
    %92 = tpu.matmul %89, %91, %cst_47 {dimension_numbers = #tpu.dot_dimension_numbers<[1], [0], [0], [1], [0, 0, 1, 1], [], []>} : vector<10x128xf32>, vector<128x256xf32>, vector<10x256xf32> -> vector<10x256xf32>
    %c0_48 = arith.constant 0 : index
    %c0_49 = arith.constant 0 : index
    %93 = vector.load %arg16[%c0_48, %c0_49] : memref<1x256xbf16, #tpu.memory_space<vmem>>, vector<1x256xbf16>
    %94 = arith.extf %93 : vector<1x256xbf16> to vector<1x256xf32>
    %95 = vector.broadcast %94 : vector<1x256xf32> to vector<10x256xf32>
    %96 = arith.addf %92, %95 : vector<10x256xf32>
    %97 = vector.extract_strided_slice %96 {offsets = [0, 0], sizes = [10, 128], strides = [1, 1]} : vector<10x256xf32> to vector<10x128xf32>
    %98 = vector.extract_strided_slice %96 {offsets = [0, 128], sizes = [10, 128], strides = [1, 1]} : vector<10x256xf32> to vector<10x128xf32>
    %c0_50 = arith.constant 0 : index
    %c0_51 = arith.constant 0 : index
    %99 = vector.load %arg17[%c0_50, %c0_51] : memref<64x128xbf16, #tpu.memory_space<vmem>>, vector<64x128xbf16>
    %100 = arith.extf %99 : vector<64x128xbf16> to vector<64x128xf32>
    %cst_52 = arith.constant dense<0.000000e+00> : vector<24x128xf32>
    %101 = tpu.matmul %6, %100, %cst_52 {dimension_numbers = #tpu.dot_dimension_numbers<[1], [0], [0], [1], [0, 0, 1, 1], [], []>} : vector<24x64xf32>, vector<64x128xf32>, vector<24x128xf32> -> vector<24x128xf32>
    %cst_53 = arith.constant dense<0.000000e+00> : vector<24x128xf32>
    %102 = tpu.matmul %1, %97, %cst_53 {dimension_numbers = #tpu.dot_dimension_numbers<[1], [0], [0], [1], [0, 0, 1, 1], [], []>} : vector<24x10xf32>, vector<10x128xf32>, vector<24x128xf32> -> vector<24x128xf32>
    %cst_54 = arith.constant dense<0.000000e+00> : vector<24x128xf32>
    %103 = tpu.matmul %3, %98, %cst_54 {dimension_numbers = #tpu.dot_dimension_numbers<[1], [0], [0], [1], [0, 0, 1, 1], [], []>} : vector<24x10xf32>, vector<10x128xf32>, vector<24x128xf32> -> vector<24x128xf32>
    %104 = arith.addf %102, %103 : vector<24x128xf32>
    %105 = arith.addf %104, %101 : vector<24x128xf32>
    %cst_55 = arith.constant 0.000000e+00 : f32
    %106 = vector.broadcast %cst_55 : f32 to vector<24x128xf32>
    %107 = arith.cmpf ogt, %105, %106 : vector<24x128xf32>
    %cst_56 = arith.constant 2.000000e-01 : f32
    %108 = vector.broadcast %cst_56 : f32 to vector<24x128xf32>
    %109 = arith.mulf %108, %105 : vector<24x128xf32>
    %110 = arith.select %107, %105, %109 : vector<24x128xi1>, vector<24x128xf32>
    %c0_57 = arith.constant 0 : index
    %c0_58 = arith.constant 0 : index
    %111 = vector.load %arg18[%c0_57, %c0_58] : memref<1x128xbf16, #tpu.memory_space<vmem>>, vector<1x128xbf16>
    %112 = arith.extf %111 : vector<1x128xbf16> to vector<1x128xf32>
    %113 = vector.broadcast %112 : vector<1x128xf32> to vector<24x128xf32>
    %114 = arith.mulf %110, %113 : vector<24x128xf32>
    %cst_59 = arith.constant dense<0.000000e+00> : vector<24xf32>
    %115 = vector.multi_reduction <add>, %114, %cst_59 [1] : vector<24x128xf32> to vector<24xf32>
    %116 = vector.shape_cast %115 : vector<24xf32> to vector<24x1xf32>
    %cst_60 = arith.constant 5.000000e-01 : f32
    %117 = vector.broadcast %cst_60 : f32 to vector<24x10xf32>
    %118 = arith.cmpf ogt, %3, %117 : vector<24x10xf32>
    %cst_61 = arith.constant -1.000000e+30 : f32
    %119 = vector.shape_cast %116 : vector<24x1xf32> to vector<24x1xf32>
    %120 = vector.broadcast %119 : vector<24x1xf32> to vector<24x10xf32>
    %121 = vector.broadcast %cst_61 : f32 to vector<24x10xf32>
    %122 = arith.select %118, %120, %121 : vector<24x10xi1>, vector<24x10xf32>
    %cst_62 = arith.constant dense<0xFF800000> : vector<10xf32>
    %123 = vector.multi_reduction <maximumf>, %122, %cst_62 [0] : vector<24x10xf32> to vector<10xf32>
    %124 = vector.shape_cast %123 : vector<10xf32> to vector<1x10xf32>
    %125 = vector.broadcast %124 : vector<1x10xf32> to vector<24x10xf32>
    %126 = arith.mulf %3, %125 : vector<24x10xf32>
    %cst_63 = arith.constant dense<0.000000e+00> : vector<24xf32>
    %127 = vector.multi_reduction <add>, %126, %cst_63 [1] : vector<24x10xf32> to vector<24xf32>
    %128 = vector.shape_cast %127 : vector<24xf32> to vector<24x1xf32>
    %129 = arith.subf %116, %128 : vector<24x1xf32>
    %130 = math.exp %129 : vector<24x1xf32>
    %131 = vector.broadcast %130 : vector<24x1xf32> to vector<24x10xf32>
    %132 = arith.mulf %3, %131 : vector<24x10xf32>
    %cst_64 = arith.constant dense<0.000000e+00> : vector<10xf32>
    %133 = vector.multi_reduction <add>, %132, %cst_64 [0] : vector<24x10xf32> to vector<10xf32>
    %134 = vector.shape_cast %133 : vector<10xf32> to vector<1x10xf32>
    %cst_65 = arith.constant 1.000000e-16 : f32
    %135 = vector.broadcast %cst_65 : f32 to vector<1x10xf32>
    %136 = arith.addf %134, %135 : vector<1x10xf32>
    %137 = vector.broadcast %136 : vector<1x10xf32> to vector<24x10xf32>
    %138 = arith.mulf %3, %137 : vector<24x10xf32>
    %cst_66 = arith.constant dense<0.000000e+00> : vector<24xf32>
    %139 = vector.multi_reduction <add>, %138, %cst_66 [1] : vector<24x10xf32> to vector<24xf32>
    %140 = vector.shape_cast %139 : vector<24xf32> to vector<24x1xf32>
    %141 = arith.divf %130, %140 : vector<24x1xf32>
    %142 = vector.broadcast %141 : vector<24x1xf32> to vector<24x128xf32>
    %143 = arith.mulf %142, %102 : vector<24x128xf32>
    %cst_67 = arith.constant dense<0.000000e+00> : vector<10x128xf32>
    %144 = tpu.matmul %5, %143, %cst_67 {dimension_numbers = #tpu.dot_dimension_numbers<[1], [0], [0], [1], [0, 0, 1, 1], [], []>} : vector<10x24xf32>, vector<24x128xf32>, vector<10x128xf32> -> vector<10x128xf32>
    %c0_68 = arith.constant 0 : index
    %c0_69 = arith.constant 0 : index
    %145 = vector.load %arg19[%c0_68, %c0_69] : memref<1x128xbf16, #tpu.memory_space<vmem>>, vector<1x128xbf16>
    %146 = arith.extf %145 : vector<1x128xbf16> to vector<1x128xf32>
    %147 = vector.broadcast %146 : vector<1x128xf32> to vector<10x128xf32>
    %148 = arith.addf %144, %147 : vector<10x128xf32>
    %cst_70 = arith.constant 0.000000e+00 : f32
    %149 = vector.broadcast %cst_70 : f32 to vector<10x128xf32>
    %150 = arith.cmpf ogt, %148, %149 : vector<10x128xf32>
    %cst_71 = arith.constant 0.000000e+00 : f32
    %151 = vector.broadcast %cst_71 : f32 to vector<10x128xf32>
    %152 = arith.minimumf %148, %151 : vector<10x128xf32>
    %153 = math.exp %152 : vector<10x128xf32>
    %cst_72 = arith.constant 1.000000e+00 : f32
    %154 = vector.broadcast %cst_72 : f32 to vector<10x128xf32>
    %155 = arith.subf %153, %154 : vector<10x128xf32>
    %156 = arith.select %150, %148, %155 : vector<10x128xi1>, vector<10x128xf32>
    %c0_73 = arith.constant 0 : index
    %c0_74 = arith.constant 0 : index
    %157 = vector.load %arg20[%c0_73, %c0_74] : memref<128x512xbf16, #tpu.memory_space<vmem>>, vector<128x512xbf16>
    %158 = arith.extf %157 : vector<128x512xbf16> to vector<128x512xf32>
    %cst_75 = arith.constant dense<0.000000e+00> : vector<10x512xf32>
    %159 = tpu.matmul %156, %158, %cst_75 {dimension_numbers = #tpu.dot_dimension_numbers<[1], [0], [0], [1], [0, 0, 1, 1], [], []>} : vector<10x128xf32>, vector<128x512xf32>, vector<10x512xf32> -> vector<10x512xf32>
    %c0_76 = arith.constant 0 : index
    %c0_77 = arith.constant 0 : index
    %160 = vector.load %arg21[%c0_76, %c0_77] : memref<1x512xbf16, #tpu.memory_space<vmem>>, vector<1x512xbf16>
    %161 = arith.extf %160 : vector<1x512xbf16> to vector<1x512xf32>
    %162 = vector.broadcast %161 : vector<1x512xf32> to vector<10x512xf32>
    %163 = arith.addf %159, %162 : vector<10x512xf32>
    %164 = vector.extract_strided_slice %163 {offsets = [0, 0], sizes = [10, 256], strides = [1, 1]} : vector<10x512xf32> to vector<10x256xf32>
    %165 = vector.extract_strided_slice %163 {offsets = [0, 256], sizes = [10, 256], strides = [1, 1]} : vector<10x512xf32> to vector<10x256xf32>
    %c0_78 = arith.constant 0 : index
    %c0_79 = arith.constant 0 : index
    %166 = vector.load %arg22[%c0_78, %c0_79] : memref<64x256xbf16, #tpu.memory_space<vmem>>, vector<64x256xbf16>
    %167 = arith.extf %166 : vector<64x256xbf16> to vector<64x256xf32>
    %cst_80 = arith.constant dense<0.000000e+00> : vector<24x256xf32>
    %168 = tpu.matmul %6, %167, %cst_80 {dimension_numbers = #tpu.dot_dimension_numbers<[1], [0], [0], [1], [0, 0, 1, 1], [], []>} : vector<24x64xf32>, vector<64x256xf32>, vector<24x256xf32> -> vector<24x256xf32>
    %cst_81 = arith.constant dense<0.000000e+00> : vector<24x256xf32>
    %169 = tpu.matmul %1, %164, %cst_81 {dimension_numbers = #tpu.dot_dimension_numbers<[1], [0], [0], [1], [0, 0, 1, 1], [], []>} : vector<24x10xf32>, vector<10x256xf32>, vector<24x256xf32> -> vector<24x256xf32>
    %cst_82 = arith.constant dense<0.000000e+00> : vector<24x256xf32>
    %170 = tpu.matmul %3, %165, %cst_82 {dimension_numbers = #tpu.dot_dimension_numbers<[1], [0], [0], [1], [0, 0, 1, 1], [], []>} : vector<24x10xf32>, vector<10x256xf32>, vector<24x256xf32> -> vector<24x256xf32>
    %171 = arith.addf %169, %170 : vector<24x256xf32>
    %172 = arith.addf %171, %168 : vector<24x256xf32>
    %cst_83 = arith.constant 0.000000e+00 : f32
    %173 = vector.broadcast %cst_83 : f32 to vector<24x256xf32>
    %174 = arith.cmpf ogt, %172, %173 : vector<24x256xf32>
    %cst_84 = arith.constant 2.000000e-01 : f32
    %175 = vector.broadcast %cst_84 : f32 to vector<24x256xf32>
    %176 = arith.mulf %175, %172 : vector<24x256xf32>
    %177 = arith.select %174, %172, %176 : vector<24x256xi1>, vector<24x256xf32>
    %c0_85 = arith.constant 0 : index
    %c0_86 = arith.constant 0 : index
    %178 = vector.load %arg23[%c0_85, %c0_86] : memref<1x256xbf16, #tpu.memory_space<vmem>>, vector<1x256xbf16>
    %179 = arith.extf %178 : vector<1x256xbf16> to vector<1x256xf32>
    %180 = vector.broadcast %179 : vector<1x256xf32> to vector<24x256xf32>
    %181 = arith.mulf %177, %180 : vector<24x256xf32>
    %cst_87 = arith.constant dense<0.000000e+00> : vector<24xf32>
    %182 = vector.multi_reduction <add>, %181, %cst_87 [1] : vector<24x256xf32> to vector<24xf32>
    %183 = vector.shape_cast %182 : vector<24xf32> to vector<24x1xf32>
    %cst_88 = arith.constant 5.000000e-01 : f32
    %184 = vector.broadcast %cst_88 : f32 to vector<24x10xf32>
    %185 = arith.cmpf ogt, %3, %184 : vector<24x10xf32>
    %cst_89 = arith.constant -1.000000e+30 : f32
    %186 = vector.shape_cast %183 : vector<24x1xf32> to vector<24x1xf32>
    %187 = vector.broadcast %186 : vector<24x1xf32> to vector<24x10xf32>
    %188 = vector.broadcast %cst_89 : f32 to vector<24x10xf32>
    %189 = arith.select %185, %187, %188 : vector<24x10xi1>, vector<24x10xf32>
    %cst_90 = arith.constant dense<0xFF800000> : vector<10xf32>
    %190 = vector.multi_reduction <maximumf>, %189, %cst_90 [0] : vector<24x10xf32> to vector<10xf32>
    %191 = vector.shape_cast %190 : vector<10xf32> to vector<1x10xf32>
    %192 = vector.broadcast %191 : vector<1x10xf32> to vector<24x10xf32>
    %193 = arith.mulf %3, %192 : vector<24x10xf32>
    %cst_91 = arith.constant dense<0.000000e+00> : vector<24xf32>
    %194 = vector.multi_reduction <add>, %193, %cst_91 [1] : vector<24x10xf32> to vector<24xf32>
    %195 = vector.shape_cast %194 : vector<24xf32> to vector<24x1xf32>
    %196 = arith.subf %183, %195 : vector<24x1xf32>
    %197 = math.exp %196 : vector<24x1xf32>
    %198 = vector.broadcast %197 : vector<24x1xf32> to vector<24x10xf32>
    %199 = arith.mulf %3, %198 : vector<24x10xf32>
    %cst_92 = arith.constant dense<0.000000e+00> : vector<10xf32>
    %200 = vector.multi_reduction <add>, %199, %cst_92 [0] : vector<24x10xf32> to vector<10xf32>
    %201 = vector.shape_cast %200 : vector<10xf32> to vector<1x10xf32>
    %cst_93 = arith.constant 1.000000e-16 : f32
    %202 = vector.broadcast %cst_93 : f32 to vector<1x10xf32>
    %203 = arith.addf %201, %202 : vector<1x10xf32>
    %204 = vector.broadcast %203 : vector<1x10xf32> to vector<24x10xf32>
    %205 = arith.mulf %3, %204 : vector<24x10xf32>
    %cst_94 = arith.constant dense<0.000000e+00> : vector<24xf32>
    %206 = vector.multi_reduction <add>, %205, %cst_94 [1] : vector<24x10xf32> to vector<24xf32>
    %207 = vector.shape_cast %206 : vector<24xf32> to vector<24x1xf32>
    %208 = arith.divf %197, %207 : vector<24x1xf32>
    %209 = vector.broadcast %208 : vector<24x1xf32> to vector<24x256xf32>
    %210 = arith.mulf %209, %169 : vector<24x256xf32>
    %cst_95 = arith.constant dense<0.000000e+00> : vector<10x256xf32>
    %211 = tpu.matmul %5, %210, %cst_95 {dimension_numbers = #tpu.dot_dimension_numbers<[1], [0], [0], [1], [0, 0, 1, 1], [], []>} : vector<10x24xf32>, vector<24x256xf32>, vector<10x256xf32> -> vector<10x256xf32>
    %c0_96 = arith.constant 0 : index
    %c0_97 = arith.constant 0 : index
    %212 = vector.load %arg24[%c0_96, %c0_97] : memref<1x256xbf16, #tpu.memory_space<vmem>>, vector<1x256xbf16>
    %213 = arith.extf %212 : vector<1x256xbf16> to vector<1x256xf32>
    %214 = vector.broadcast %213 : vector<1x256xf32> to vector<10x256xf32>
    %215 = arith.addf %211, %214 : vector<10x256xf32>
    %c0_98 = arith.constant 0 : index
    %c0_99 = arith.constant 0 : index
    %216 = vector.load %arg6[%c0_98, %c0_99] : memref<2x10xf32, #tpu.memory_space<vmem>>, vector<2x10xf32>
    %cst_100 = arith.constant dense<0.000000e+00> : vector<2x256xf32>
    %217 = tpu.matmul %216, %215, %cst_100 {dimension_numbers = #tpu.dot_dimension_numbers<[1], [0], [0], [1], [0, 0, 1, 1], [], []>} : vector<2x10xf32>, vector<10x256xf32>, vector<2x256xf32> -> vector<2x256xf32>
    %c0_101 = arith.constant 0 : index
    %c0_102 = arith.constant 0 : index
    %218 = vector.load %arg25[%c0_101, %c0_102] : memref<2x256xf32, #tpu.memory_space<vmem>>, vector<2x256xf32>
    tpu.vector_store %arg25[%c0_101, %c0_102], %217 {strides = array<i32>} : memref<2x256xf32, #tpu.memory_space<vmem>>, vector<2x256xf32>,
    return
  }
}

</mosaic_0001>

<bundles_post_ra>
// kernel: tpu_custom_call.1
= control target key start
LH: loop header
LB: loop body
LE: loop exit
PB: predicated region body
PF: predicated region fallthrough
CT: control target
= control target key end

     0   :  { %s2970_s0 = inlined_call_operand.vmem [shape: bf16[10,60], index: 0, kind: input, shape index: {}]   ;;  %s2971_s1 = inlined_call_operand.vmem [shape: f32[10,1], index: 1, kind: input, shape index: {}]   ;;  %s2972_s2 = inlined_call_operand.hbm [shape: f32[24,64], index: 2, kind: input, shape index: {}]   ;;  %s2973_s3 = inlined_call_operand.vmem [shape: bf16[24,10], index: 3, kind: input, shape index: {}]   ;;  %s2974_s4 = inlined_call_operand.vmem [shape: bf16[24,10], index: 4, kind: input, shape index: {}]   ;;  %s2975_s5 = inlined_call_operand.vmem [shape: bf16[10,24], index: 5, kind: input, shape index: {}]   ;;  %s2976_s6 = inlined_call_operand.hbm [shape: f32[2,10], index: 6, kind: input, shape index: {}]   ;;  %s2977_s7 = inlined_call_operand.vmem [shape: bf16[60,64], index: 7, kind: input, shape index: {}]   ;;  %s2978_s8 = inlined_call_operand.hbm [shape: bf16[1,64], index: 8, kind: input, shape index: {}]   ;;  %s2979_s9 = inlined_call_operand.hbm [shape: bf16[1,64], index: 9, kind: input, shape index: {}]   ;;  %s2980_s10 = inlined_call_operand.hbm [shape: bf16[64,256], index: 10, kind: input, shape index: {}]   ;;  %s2981_s11 = inlined_call_operand.vmem [shape: bf16[1,256], index: 11, kind: input, shape index: {}]   ;;  %s2982_s12 = inlined_call_operand.hbm [shape: bf16[64,128], index: 12, kind: input, shape index: {}]   ;;  %s2983_s13 = inlined_call_operand.hbm [shape: bf16[1,128], index: 13, kind: input, shape index: {}]   ;;  %s2984_s14 = inlined_call_operand.vmem [shape: bf16[1,128], index: 14, kind: input, shape index: {}]   ;;  %s2985_s15 = inlined_call_operand.hbm [shape: bf16[128,256], index: 15, kind: input, shape index: {}]   ;;  %s2986_s16 = inlined_call_operand.vmem [shape: bf16[1,256], index: 16, kind: input, shape index: {}]   ;;  %s2987_s17 = inlined_call_operand.hbm [shape: bf16[64,128], index: 17, kind: input, shape index: {}]   ;;  %s2988_s18 = inlined_call_operand.vmem [shape: bf16[1,128], index: 18, kind: input, shape index: {}]   ;;  %s2989_s19 = inlined_call_operand.vmem [shape: bf16[1,128], index: 19, kind: input, shape index: {}]   ;;  %s2990_s20 = inlined_call_operand.hbm [shape: bf16[128,512], index: 20, kind: input, shape index: {}]   ;;  %s2991_s21 = inlined_call_operand.vmem [shape: bf16[1,512], index: 21, kind: input, shape index: {}]   ;;  %s2992_s22 = inlined_call_operand.hbm [shape: bf16[64,256], index: 22, kind: input, shape index: {}]   ;;  %s2993_s23 = inlined_call_operand.vmem [shape: bf16[1,256], index: 23, kind: input, shape index: {}]   ;;  %s2994_s24 = inlined_call_operand.vmem [shape: bf16[1,256], index: 24, kind: input, shape index: {}]   ;;  %s2995_s25 = inlined_call_operand.hbm [shape: f32[2,256], index: 25, kind: output, shape index: {}]  }
   0x1   :  { %3004 = sst [smem:[#allocation28_spill]] %s2970_s0 }
   0x2   :  { %3005 = sst [smem:[#allocation29_spill]] %s2971_s1 }
   0x3   :  { %3006 = sst [smem:[#allocation30_spill]] %s2972_s2 }
   0x4   :  { %3007 = sst [smem:[#allocation31_spill]] %s2973_s3 }
   0x5   :  { %3008 = sst [smem:[#allocation32_spill]] %s2974_s4 }
   0x6   :  { %3009 = sst [smem:[#allocation33_spill]] %s2975_s5 }
   0x7   :  { %3010 = sst [smem:[#allocation34_spill]] %s2976_s6 }
   0x8   :  { %3011 = sst [smem:[#allocation35_spill]] %s2977_s7 }
   0x9   :  { %3012 = sst [smem:[#allocation36_spill]] %s2978_s8 }
   0xa   :  { %3013 = sst [smem:[#allocation37_spill]] %s2979_s9 }
   0xb   :  { %3014 = sst [smem:[#allocation38_spill]] %s2995_s25 }
   0xc   :  { %30 = vsyncpa [#allocation3], 0 }
   0xd   :  { %31 = vsyncpa [#allocation6], 0 }
   0xe   :  { %32 = vsyncpa [#allocation9], 0 }
   0xf   :  { %33 = vsyncpa [#allocation12], 0 }
  0x10   :  { %34 = vsyncpa [#allocation15], 0 }
  0x11   :  { %35 = vsyncpa [#allocation18], 0  ;;  %s3015_s6 = sld [smem:[#allocation34_spill]] }
  0x17   :  { %s65_s30 = sshll.u32 %s3015_s6, 4  ;;  %s66_s30 = int_to_ptr.hbm [resolvable:$true] %s65_s30 }
  0x18   :  { %36 = vsyncpa [#allocation4], 0  ;;  %s2308_s7 = smov [#allocation5]   ;;  %s3016_s8 = sld [smem:[#allocation37_spill]] }
  0x19   :  { %s67_s3 = sshll.u32 %s2308_s7, 4  ;;  %s2309_s4 = smov [#allocation8]   ;;  %s68_s3 = int_to_ptr.vmem [resolvable:$true] %s67_s3 }
  0x1a   :  { %70 = dma.hbm_to_vmem [thread:$0]  %s66_s30, 32, %s68_s3, [#allocation6]  }
  0x1b   :  { %s91_s28 = sshll.u32 %s2309_s4, 4  ;;  %s114_s0 = sshll.u32 %s2982_s12, 4  ;;  %s92_s28 = int_to_ptr.vmem [resolvable:$true] %s91_s28  ;;  %s115_s0 = int_to_ptr.hbm [resolvable:$true] %s114_s0 }
  0x1c   :  { %s2310_s29 = smov [#allocation11]   ;;  %s3002_s6 = smov 64  }
  0x1d   :  { %s116_s2 = sshll.u32 %s2310_s29, 4  ;;  %s3003_s7 = smov 4   ;;  %s117_s2 = int_to_ptr.vmem [resolvable:$true] %s116_s2 }
  0x1e   :  { %s89_s27 = sshll.u32 %s3016_s8, 4  ;;  %s140_s26 = sshll.u32 %s2985_s15, 4  ;;  %s90_s27 = int_to_ptr.hbm [resolvable:$true] %s89_s27  ;;  %s141_s26 = int_to_ptr.hbm [resolvable:$true] %s140_s26 }
  0x1f   :  { %94 = dma.hbm_to_vmem [thread:$0]  %s90_s27, 16, %s92_s28, [#allocation9]  }
  0x20   :  { %122 = dma.hbm_to_vmem [thread:$0]  %s115_s0, 512, %s117_s2, [#allocation12], %s3002_s6, %s3002_s6, %s3003_s7  }
  0x21   :  { %s2313_s1 = smov [#allocation14]   ;;  %s172_s27 = sshll.u32 %s2990_s20, 4  ;;  %s173_s27 = int_to_ptr.hbm [resolvable:$true] %s172_s27 }
  0x22   :  { %s142_s8 = sshll.u32 %s2313_s1, 4  ;;  %s2314_s28 = smov 128   ;;  %s143_s8 = int_to_ptr.vmem [resolvable:$true] %s142_s8 }
  0x23   :  { %s2315_s9 = smov 8   ;;  %s2316_s5 = smov [#allocation17]  }
  0x24   :  { %148 = dma.hbm_to_vmem [thread:$0]  %s141_s26, 2048, %s143_s8, [#allocation15], %s2314_s28, %s2314_s28, %s2315_s9  }
  0x25   :  { %s174_s0 = sshll.u32 %s2316_s5, 4  ;;  %s3017_s2 = sld [smem:[#allocation30_spill]]  ;;  %s175_s0 = int_to_ptr.vmem [resolvable:$true] %s174_s0 }
  0x26   :  { %s2317_s3 = smov 256   ;;  %s2318_s1 = smov 16  }
  0x27   :  { %180 = dma.hbm_to_vmem [thread:$0]  %s173_s27, 4096, %s175_s0, [#allocation18], %s2317_s3, %s2317_s3, %s2318_s1  }
  0x28   :  { %s2319_s20 = smov [#allocation2]   ;;  %s3018_s7 = sld [smem:[#allocation36_spill]] }
  0x29   :  { %s47_s12 = sshll.u32 %s2319_s20, 4  ;;  %s99_s5 = sshll.u32 %s2980_s10, 4  ;;  %s48_s12 = int_to_ptr.vmem [resolvable:$true] %s47_s12  ;;  %s100_s5 = int_to_ptr.hbm [resolvable:$true] %s99_s5 }
  0x2a   :  { %s2320_s29 = smov [#allocation7]   ;;  %s2321_s27 = smov [#allocation10]  }
  0x2b   :  { %s45_s30 = sshll.u32 %s3017_s2, 4  ;;  %s80_s15 = sshll.u32 %s2320_s29, 4  ;;  %s46_s30 = int_to_ptr.hbm [resolvable:$true] %s45_s30  ;;  %s81_s15 = int_to_ptr.vmem [resolvable:$true] %s80_s15 }
  0x2c   :  { %53 = dma.hbm_to_vmem [thread:$0]  %s46_s30, 384, %s48_s12, [#allocation3], %s2314_s28, %s2314_s28, %s2315_s9  }
  0x2d   :  { %s101_s0 = sshll.u32 %s2321_s27, 4  ;;  %s155_s10 = sshll.u32 %s2987_s17, 4  ;;  %s102_s0 = int_to_ptr.vmem [resolvable:$true] %s101_s0  ;;  %s156_s10 = int_to_ptr.hbm [resolvable:$true] %s155_s10 }
  0x2e   :  { %s78_s25 = sshll.u32 %s3018_s7, 4  ;;  %s128_s7 = sshll.u32 %s2983_s13, 4  ;;  %s79_s25 = int_to_ptr.hbm [resolvable:$true] %s78_s25  ;;  %s129_s7 = int_to_ptr.hbm [resolvable:$true] %s128_s7 }
  0x2f   :  { %83 = dma.hbm_to_vmem [thread:$0]  %s79_s25, 16, %s81_s15, [#allocation6]  }
  0x30   :  { %107 = dma.hbm_to_vmem [thread:$0]  %s100_s5, 1024, %s102_s0, [#allocation9], %s2314_s28, %s2314_s28, %s2315_s9  }
  0x31   :  { %s2322_s1 = smov [#allocation13]   ;;  %s2323_s25 = smov [#allocation16]  }
  0x32   :  { %s130_s20 = sshll.u32 %s2322_s1, 4  ;;  %s157_s12 = sshll.u32 %s2323_s25, 4  ;;  %s131_s20 = int_to_ptr.vmem [resolvable:$true] %s130_s20  ;;  %s158_s12 = int_to_ptr.vmem [resolvable:$true] %s157_s12 }
  0x33   :  { %133 = dma.hbm_to_vmem [thread:$0]  %s129_s7, 16, %s131_s20, [#allocation12]  }
  0x34   :  { %s187_s13 = sshll.u32 %s2992_s22, 4  ;;  %s3019_s8 = smov 4   ;;  %s188_s13 = int_to_ptr.hbm [resolvable:$true] %s187_s13 }
  0x35   :  { %s3020_s29 = smov 64   ;;  %s2324_s5 = smov [#allocation19]  }
  0x36   :  { %163 = dma.hbm_to_vmem [thread:$0]  %s156_s10, 512, %s158_s12, [#allocation15], %s3020_s29, %s3020_s29, %s3019_s8  }
  0x37   :  { %s189_s15 = sshll.u32 %s2324_s5, 4  ;;  %s190_s15 = int_to_ptr.vmem [resolvable:$true] %s189_s15 }
  0x38   :  { %195 = dma.hbm_to_vmem [thread:$0]  %s188_s13, 1024, %s190_s15, [#allocation18], %s2314_s28, %s2314_s28, %s2315_s9  }
  0x39   :  { %2294 = dma.done.wait [#allocation3], 384  }
  0x3a   :  { %2295 = vsyncadd [#allocation3], 4294966912 }
  0x3b   :  { %2296 = dma.done.wait [#allocation6], 48  }
  0x3c   :  { %2297 = vsyncadd [#allocation6], 4294967248 }
  0x3d   :  { %2298 = dma.done.wait [#allocation9], 1040  }
  0x3e   :  { %2299 = vsyncadd [#allocation9], 4294966256 }
  0x3f   :  { %2300 = dma.done.wait [#allocation12], 528  }
  0x40   :  { %2301 = vsyncadd [#allocation12], 4294966768 }
  0x41   :  { %2302 = dma.done.wait [#allocation15], 2560  }
  0x42   :  { %2303 = vsyncadd [#allocation15], 4294964736 }
  0x43   :  { %2304 = dma.done.wait [#allocation18], 5120  }
  0x44   :  { %2305 = vsyncadd [#allocation18], 4294962176  ;;  %v2325_v0 = vmov 0   ;;  %s3021_s27 = sld [smem:[#allocation35_spill]]  ;;  %vm307_vm0 = vcmask 1043456   ;;  %v346_v8 = vld [vmem:[#allocation10 + $0x38] sm:$0xff] }
  0x45   :  { %1958 = vset.pattern.permute.xlu0 %v2325_v0  ;;  %s3022_s30 = sld [smem:[#allocation29_spill]]  ;;  %v361_v10 = vunpack.c.l.bf16 %v346_v8  ;;  %v362_v11 = vunpack.c.h.bf16 %v346_v8  ;;  %vm300_vm1 = vcmask 490496   ;;  %v345_v23 = vld [vmem:[#allocation10 + $0x30] sm:$0xff]  ;;  %v344_v24 = vld [vmem:[#allocation10 + $0x28] sm:$0xff]  ;;  %v343_v25 = vld [vmem:[#allocation10 + $0x20] sm:$0xff]  ;;  %vm372_vm2 = vcmask 523264  }
  0x46   :  { %s3023_s13 = sld [smem:[#allocation28_spill]]  ;;  %v359_v26 = vunpack.c.l.bf16 %v345_v23  ;;  %v360_v27 = vunpack.c.h.bf16 %v345_v23  ;;  %v357_v28 = vunpack.c.l.bf16 %v344_v24  ;;  %v358_v29 = vunpack.c.h.bf16 %v344_v24  ;;  %v342_v30 = vld [vmem:[#allocation10 + $0x18] sm:$0xff]  ;;  %v341_v35 = vld [vmem:[#allocation10 + $0x10] sm:$0xff]  ;;  %v340_v38 = vld [vmem:[#allocation10 + $0x8] sm:$0xff] }
  0x47   :  { %387 = vmatpush.msra.mxu1 %v361_v10  ;;  %410 = vmatpush.msra.mxu2 %v362_v11  ;;  %v355_v31 = vunpack.c.l.bf16 %v343_v25  ;;  %v356_v32 = vunpack.c.h.bf16 %v343_v25  ;;  %v353_v33 = vunpack.c.l.bf16 %v342_v30  ;;  %v354_v34 = vunpack.c.h.bf16 %v342_v30  ;;  %v339_v41 = vld [vmem:[#allocation10] sm:$0xff]  ;;  %v285_v44 = vld [vmem:[#allocation7] sm:$0x1]  ;;  %v334_v46 = vld [vmem:[#allocation8] sm:$0x1]  ;;  %s3025_s9 = sld [smem:[#allocation32_spill]] }
  0x48   :  { %v351_v36 = vunpack.c.l.bf16 %v341_v35  ;;  %v352_v37 = vunpack.c.h.bf16 %v341_v35  ;;  %v349_v39 = vunpack.c.l.bf16 %v340_v38  ;;  %v350_v40 = vunpack.c.h.bf16 %v340_v38  ;;  %v1935_v60 = vld [vmem:[#allocation11 + $0x18] sm:$0xff]   ;;  %v1934_v63 = vld [vmem:[#allocation11 + $0x10] sm:$0xff]   ;;  %v2539_v8 = vld [vmem:[#allocation2] sm:$0xff]  ;;  %s3026_s10 = sld [smem:[#allocation33_spill]] }
  0x49   :  { %388 = vmatpush.msra.mxu1 %v359_v26  ;;  %411 = vmatpush.msra.mxu2 %v360_v27  ;;  %v347_v42 = vunpack.c.l.bf16 %v339_v41  ;;  %v348_v43 = vunpack.c.h.bf16 %v339_v41  ;;  %v286_v45 = vunpack.c.l.bf16 %v285_v44  ;;  %v335_v49 = vunpack.c.l.bf16 %v334_v46  ;;  %v363_v10 = vld [vmem:[%s2981_s11] sm:$0x3]  ;;  %v2550_v11 = vld [vmem:[#allocation2 + $0x10] sm:$0xff] }
  0x4a   :  { %v274_v1 = vld [vmem:[%s3021_s27 + $0x1c] sm:$0x3]  ;;  %v273_v2 = vld [vmem:[%s3021_s27 + $0x18] sm:$0xf]  ;;  %v1932_v3 = vld [vmem:[%s3021_s27 + $0x10] sm:$0xff]   ;;  %v1914_v61 = vunpack.c.h.bf16 %v1935_v60  ;;  %v1913_v62 = vunpack.c.l.bf16 %v1935_v60  ;;  %v1910_v0 = vunpack.c.h.bf16 %v1934_v63  ;;  %vm486_vm3 = vcmask 1041408  }
  0x4b   :  { %v282_v4 = vunpack.c.l.bf16 %v274_v1  ;;  %v281_v5 = vunpack.c.l.bf16 %v273_v2  ;;  %v283_v6 = vld [vmem:[%s3022_s30] sm:$0xff]  ;;  %v1898_v7 = vunpack.c.h.bf16 %v1932_v3  ;;  %v1931_v9 = vld [vmem:[%s3021_s27 + $0x8] sm:$0xff]   ;;  %v1897_v12 = vunpack.c.l.bf16 %v1932_v3  ;;  %389 = vmatpush.msra.mxu1 %v357_v28  ;;  %412 = vmatpush.msra.mxu2 %v358_v29 }
  0x4c   :  { %289 = vperm.xlu0 %1958, %v283_v6   ;;  %v1894_v13 = vunpack.c.h.bf16 %v1931_v9  ;;  %v1888_v14 = vld [vmem:[%s3021_s27] sm:$0xff]   ;;  %v284_v15 = vld [vmem:[%s3022_s30 + $0x8] sm:$0x3]  ;;  %v1893_v16 = vunpack.c.l.bf16 %v1931_v9  ;;  %v297_v47 = vperm.slane %v286_v45, 0  ;;  %v336_v51 = vperm.slane %v335_v49, 0  ;;  %458 = vmatpush.msra.mxu3 %v1914_v61  ;;  %s3024_s27 = sld [smem:[#allocation31_spill]] }
  0x4d   :  { %1812 = vmatpush.msk.msra.mxu0 %vm307_vm0, %v282_v4  ;;  %v1890_v17 = vunpack.c.h.bf16 %v1888_v14  ;;  %v263_v18 = vld [vmem:[%s3023_s13] sm:$0xf]  ;;  %v1889_v19 = vunpack.c.l.bf16 %v1888_v14  ;;  %v264_v21 = vld [vmem:[%s3023_s13 + $0x4] sm:$0x1]  ;;  %390 = vmatpush.msra.mxu1 %v355_v31  ;;  %v1909_v1 = vunpack.c.l.bf16 %v1934_v63  ;;  %v1933_v2 = vld [vmem:[#allocation11 + $0x8] sm:$0xff]   ;;  %vm476_vm4 = vcmask 80896  }
  0x4e   :  { %v265_v20 = vunpack.c.l.bf16 %v263_v18  ;;  %v266_v22 = vunpack.c.l.bf16 %v264_v21  ;;  %413 = vmatpush.msra.mxu2 %v356_v32  ;;  %459 = vmatpush.msra.mxu3 %v1913_v62  ;;  %v1906_v3 = vunpack.c.h.bf16 %v1933_v2  ;;  %v1905_v4 = vunpack.c.l.bf16 %v1933_v2  ;;  %v2543_v9 = vld [vmem:[#allocation2 + $0x8] sm:$0xff]  ;;  %v1884_v24 = vld [vmem:[%s3025_s9] sm:$0xff]  }
  0x4f   :  { %320 = vmatpush.msra.mxu0 %v281_v5  ;;  %391 = vmatpush.msra.mxu1 %v353_v33  ;;  %v1900_v5 = vld [vmem:[#allocation11] sm:$0xff]   ;;  %v2565_v27 = vunpack.c.l.bf16 %v1884_v24  ;;  %v2577_v31 = vunpack.c.h.bf16 %v1884_v24  ;;  %v252_v33 = vld [vmem:[%s3025_s9 + $0x8] sm:$0xf] }
  0x50   :  { %414 = vmatpush.msra.mxu2 %v354_v34  ;;  %460 = vmatpush.msra.mxu3 %v1910_v0  ;;  %v1902_v6 = vunpack.c.h.bf16 %v1900_v5  ;;  %v2588_v34 = vunpack.c.l.bf16 %v252_v33 }
  0x51   :  { %321 = vmatpush.msra.mxu0 %v1898_v7  ;;  %392 = vmatpush.msra.mxu1 %v351_v36  ;;  %v1901_v7 = vunpack.c.l.bf16 %v1900_v5  ;;  %vm582_vm8 = vcmp.gt.f32.partialorder %v2577_v31, 0.5  ;;  %vm581_vm9 = vcmp.gt.f32.partialorder %v2565_v27, 0.5 }
  0x52   :  { %415 = vmatpush.msra.mxu2 %v352_v37  ;;  %461 = vmatpush.msra.mxu3 %v1909_v1  ;;  %v246_v30 = vld [vmem:[%s3024_s27 + $0x8] sm:$0xf]  ;;  %v569_v37 = vld [vmem:[#allocation13] sm:$0x1]  ;;  %vm583_vm10 = vcmp.gt.f32.partialorder %v2588_v34, 0.5 }
  0x53   :  { %322 = vmatpush.msra.mxu0 %v1897_v12  ;;  %393 = vmatpush.msra.mxu1 %v349_v39  ;;  %v364_v12 = vunpack.c.l.bf16 %v363_v10  ;;  %v2579_v32 = vunpack.c.l.bf16 %v246_v30  ;;  %v570_v39 = vunpack.c.l.bf16 %v569_v37 }
  0x54   :  { %294 = vperm.xlu0 %1958, %v284_v15   ;;  %416 = vmatpush.msra.mxu2 %v350_v40 }
  0x55   :  { %323 = vmatpush.msra.mxu0 %v1894_v13  ;;  %394 = vmatpush.msra.mxu1 %v347_v42  ;;  %v366_v14 = vperm.slane %v364_v12, 0 }
  0x56   :  { %417 = vmatpush.msra.mxu2 %v348_v43  ;;  %462 = vmatpush.msra.mxu3 %v1906_v3  ;;  %v571_v43 = vperm.slane %v570_v39, 0 }
  0x57   :  { %324 = vmatpush.msra.mxu0 %v1893_v16  ;;  %v370_v16 = vperm.slane %v366_v14, 0 }
  0x58   :  { %463 = vmatpush.msra.mxu3 %v1905_v4 }
  0x59   :  { %325 = vmatpush.msra.mxu0 %v1890_v17  ;;  %v1880_v17 = vld [vmem:[%s3024_s27] sm:$0xff]   ;;  %s3031_s27 = sld [smem:[#allocation38_spill]] }
  0x5a   :  { %464 = vmatpush.msra.mxu3 %v1902_v6  ;;  %v2557_v21 = vunpack.c.l.bf16 %v1880_v17  ;;  %v2568_v29 = vunpack.c.h.bf16 %v1880_v17 }
  0x5b   :  { %326 = vmatpush.msra.mxu0 %v1889_v19  ;;  %v367_v19 = vperm.slane %v364_v12, 2 }
  0x5c   :  { %1813 = vmatmul.msk.f32.vlgmr.msra.gmra.mxu0 %vm300_vm1, %v265_v20  ;;  %465 = vmatpush.msra.mxu3 %v1901_v7 }
  0x5d   :  { %1819 = vmatmul.msk.f32.vlgmr.msra.gmra.mxu3 %vm372_vm2, %v2539_v8  ;;  %v371_v23 = vperm.slane %v367_v19, 0 }
  0x5f   :  { %s1797_s11 = sshll.u32 %s3031_s27, 4  ;;  %s1798_s11 = int_to_ptr.hbm [resolvable:$true] %s1797_s11 }
  0x64   :  { %1814 = vmatmul.msk.f32.gmra.mxu0 %vm300_vm1, %v266_v22 }
  0x65   :  { %1820 = vmatmul.msk.f32.gmra.mxu3 %vm372_vm2, %v2543_v9 }
  0x6d   :  { %1821 = vmatmul.msk.f32.gmra.mxu3 %vm372_vm2, %v2550_v11 }
  0xbe   :  { %v290_v48 = vpop.permute.xlu0 %289 }
  0xbf   :  { %v298_v50 = vmul.f32 %v297_v47, %v290_v48 }
  0xc6   :  { %v295_v55 = vpop.permute.xlu0 %294 }
  0xc7   :  { %v299_v56 = vmul.f32 %v297_v47, %v295_v55 }
  0xd9   :  { %v328_v52 = vpop.f32.mrf.mxu0 }
  0xda   :  { %v329_v53 = vadd.f32 %v328_v52, %v298_v50 }
  0xdc   :  { %v337_v54 = vadd.f32 %v336_v51, %v329_v53 }
  0xde   :  { %1815 = vmatmul.msk.f32.vlgmr.msra.gmra.mxu1 %vm372_vm2, %v337_v54  ;;  %1817 = vmatmul.msk.f32.vlgmr.msra.gmra.mxu2 %vm372_vm2, %v337_v54 }
  0xe0   :  { %v467_v36 = vpop.f32.mrf.mxu3 }
  0xe1   :  { %v331_v57 = vpop.f32.mrf.mxu0 }
  0xe2   :  { %v332_v58 = vadd.f32 %v331_v57, %v299_v56 }
  0xe4   :  { %v338_v59 = vadd.f32 %v336_v51, %v332_v58 }
  0xe6   :  { %1816 = vmatmul.msk.f32.gmra.mxu1 %vm372_vm2, %v338_v59  ;;  %1818 = vmatmul.msk.f32.gmra.mxu2 %vm372_vm2, %v338_v59 }
  0xe8   :  { %v470_v45 = vpop.f32.mrf.mxu3 }
  0xf0   :  { %v473_v55 = vpop.f32.mrf.mxu3 }
 0x15b   :  { %v396_v13 = vpop.f32.mrf.mxu1 }
 0x15c   :  { %v397_v22 = vadd.f32 %v396_v13, %v370_v16 }
 0x161   :  { %v419_v15 = vpop.f32.mrf.mxu2 }
 0x162   :  { %v420_v28 = vadd.f32 %v419_v15, %v371_v23 }
 0x163   :  { %v399_v18 = vpop.f32.mrf.mxu1 }
 0x164   :  { %v400_v20 = vadd.f32 %v399_v18, %v370_v16 }
 0x166   :  { %1822 = vmatpush.msk.msrb.mxu0 %vm486_vm3, %v400_v20 }
 0x168   :  { %505 = vmatpush.msrb.mxu0 %v397_v22 }
 0x169   :  { %v422_v25 = vpop.f32.mrf.mxu2  ;;  %1823 = vmatmul.msk.f32.vlgmr.msrb.gmra.mxu0 %vm476_vm4, %v2557_v21 }
 0x16a   :  { %v423_v26 = vadd.f32 %v422_v25, %v371_v23 }
 0x16c   :  { %1826 = vmatpush.msk.msrb.mxu1 %vm486_vm3, %v423_v26 }
 0x16e   :  { %543 = vmatpush.msrb.mxu1 %v420_v28 }
 0x16f   :  { %1827 = vmatmul.msk.f32.vlgmr.msrb.gmra.mxu1 %vm476_vm4, %v2565_v27 }
 0x171   :  { %1824 = vmatmul.msk.f32.gmra.mxu0 %vm476_vm4, %v2568_v29 }
 0x177   :  { %1828 = vmatmul.msk.f32.gmra.mxu1 %vm476_vm4, %v2577_v31 }
 0x179   :  { %1825 = vmatmul.msk.f32.gmra.mxu0 %vm476_vm4, %v2579_v32 }
 0x17f   :  { %1829 = vmatmul.msk.f32.gmra.mxu1 %vm476_vm4, %v2588_v34 }
 0x1e6   :  { %v2592_v35 = vpop.f32.mrf.mxu0 }
 0x1ec   :  { %v545_v38 = vpop.f32.mrf.mxu1 }
 0x1ed   :  { %v554_v40 = vadd.f32 %v545_v38, %v2592_v35 }
 0x1ee   :  { %v2595_v42 = vpop.f32.mrf.mxu0 }
 0x1ef   :  { %v557_v41 = vadd.f32 %v554_v40, %v467_v36 }
 0x1f1   :  { %v563_v44 = vmul.f32 0.2, %v557_v41  ;;  %vm560_vm5 = vcmp.gt.f32.partialorder %v557_v41, 0.0 }
 0x1f3   :  { %v566_v46 = vsel %vm560_vm5, %v557_v41, %v563_v44 }
 0x1f4   :  { %v548_v47 = vpop.f32.mrf.mxu1  ;;  %v572_v48 = vmul.f32 %v571_v43, %v566_v46 }
 0x1f5   :  { %v555_v49 = vadd.f32 %v548_v47, %v2595_v42 }
 0x1f6   :  { %575 = vadd.xlane.f32.xlu1 %v572_v48  ;;  %v2598_v52 = vpop.f32.mrf.mxu0 }
 0x1f7   :  { %v558_v50 = vadd.f32 %v555_v49, %v470_v45 }
 0x1f9   :  { %v564_v51 = vmul.f32 0.2, %v558_v50  ;;  %vm561_vm6 = vcmp.gt.f32.partialorder %v558_v50, 0.0 }
 0x1fb   :  { %v567_v53 = vsel %vm561_vm6, %v558_v50, %v564_v51 }
 0x1fc   :  { %v551_v54 = vpop.f32.mrf.mxu1  ;;  %v573_v56 = vmul.f32 %v571_v43, %v567_v53 }
 0x1fd   :  { %v556_v57 = vadd.f32 %v551_v54, %v2598_v52 }
 0x1fe   :  { %577 = vadd.xlane.f32.xlu1 %v573_v56 }
 0x1ff   :  { %v559_v58 = vadd.f32 %v556_v57, %v473_v55 }
 0x201   :  { %v565_v59 = vmul.f32 0.2, %v559_v58  ;;  %vm562_vm7 = vcmp.gt.f32.partialorder %v559_v58, 0.0 }
 0x203   :  { %v568_v60 = vsel %vm562_vm7, %v559_v58, %v565_v59 }
 0x204   :  { %v574_v61 = vmul.f32 %v571_v43, %v568_v60 }
 0x206   :  { %579 = vadd.xlane.f32.xlu2 %v574_v61 }
 0x269   :  { %v576_v62 = vpop.xlane.xlu1 %575 }
 0x26a   :  { %v584_v1 = vsel %vm581_vm9, %v576_v62, -1e+30 }
 0x26b   :  { %v587_v3 = vsel %vm476_vm4, %v584_v1, -inf }
 0x271   :  { %v578_v63 = vpop.xlane.xlu1 %577 }
 0x272   :  { %v585_v0 = vsel %vm582_vm8, %v578_v63, -1e+30 }
 0x273   :  { %v588_v2 = vsel %vm476_vm4, %v585_v0, -inf }
 0x274   :  { %v590_v5 = vmax.f32 %v587_v3, %v588_v2 }
 0x279   :  { %v580_v4 = vpop.xlane.xlu2 %579 }
 0x27a   :  { %v586_v6 = vsel %vm583_vm10, %v580_v4, -1e+30 }
 0x27b   :  { %v589_v7 = vsel %vm476_vm4, %v586_v6, -inf  ;;  %v753_v6 = vld [vmem:[#allocation14 + $0x70] sm:$0xff] }
 0x27c   :  { %v591_v10 = vmax.f32 %v590_v5, %v589_v7  ;;  %v754_v5 = vld [vmem:[#allocation14 + $0x78] sm:$0xff] }
 0x27e   :  { %v592_v12 = vrot.slane %v591_v10, 4 }
 0x280   :  { %v593_v13 = vmax.f32 %v591_v10, %v592_v12 }
 0x282   :  { %v594_v14 = vrot.slane %v593_v13, 2 }
 0x284   :  { %v595_v15 = vmax.f32 %v593_v13, %v594_v14  ;;  %v785_v13 = vunpack.c.l.bf16 %v754_v5  ;;  %v786_v14 = vunpack.c.h.bf16 %v754_v5 }
 0x286   :  { %v596_v16 = vrot.slane %v595_v15, 1  ;;  %796 = vmatpush.msrb.mxu3 %v785_v13  ;;  %819 = vmatpush.msra.mxu0 %v786_v14 }
 0x288   :  { %v597_v17 = vmax.f32 %v595_v15, %v596_v16  ;;  %v752_v15 = vld [vmem:[#allocation14 + $0x68] sm:$0xff] }
 0x28a   :  { %v600_v18 = vmul.f32 %v597_v17, %v2588_v34  ;;  %v599_v19 = vmul.f32 %v2577_v31, %v597_v17  ;;  %v598_v20 = vmul.f32 %v2565_v27, %v597_v17  ;;  %v751_v17 = vld [vmem:[#allocation14 + $0x60] sm:$0xff] }
 0x28c   :  { %v607_v22 = vsel %vm476_vm4, %v600_v18, 0.0  ;;  %v604_v23 = vsel %vm476_vm4, %v599_v19, 0.0  ;;  %v601_v24 = vsel %vm476_vm4, %v598_v20, 0.0 }
 0x28d   :  { %608 = vadd.xlane.f32.xlu1 %v607_v22  ;;  %605 = vadd.xlane.f32.xlu0 %v604_v23  ;;  %v783_v22 = vunpack.c.l.bf16 %v753_v6 }
 0x28e   :  { %602 = vadd.xlane.f32.xlu2 %v601_v24 }
 0x28f   :  { %797 = vmatpush.msrb.mxu3 %v783_v22 }
 0x300   :  { %v609_v25 = vpop.xlane.xlu1 %608  ;;  %v606_v26 = vpop.xlane.xlu0 %605 }
 0x301   :  { %v612_v28 = vsub.f32 %v580_v4, %v609_v25  ;;  %v611_v30 = vsub.f32 %v578_v63, %v606_v26  ;;  %v603_v33 = vpop.xlane.xlu2 %602  ;;  %v784_v25 = vunpack.c.h.bf16 %v753_v6  ;;  %v781_v26 = vunpack.c.l.bf16 %v752_v15 }
 0x302   :  { %v610_v36 = vsub.f32 %v576_v62, %v603_v33  ;;  %v782_v33 = vunpack.c.h.bf16 %v752_v15 }
 0x303   :  { %v617_v37 = vmul.f32 1.442695, %v612_v28  ;;  %v615_v38 = vmul.f32 1.442695, %v611_v30  ;;  %v750_v28 = vld [vmem:[#allocation14 + $0x58] sm:$0xff]  ;;  %820 = vmatpush.msra.mxu0 %v784_v25  ;;  %798 = vmatpush.msrb.mxu3 %v781_v26 }
 0x304   :  { %v613_v39 = vmul.f32 1.442695, %v610_v36  ;;  %v779_v36 = vunpack.c.l.bf16 %v751_v17 }
 0x305   :  { %1959 = vpow2.f32 %v617_v37  ;;  %821 = vmatpush.msra.mxu0 %v782_v33 }
 0x306   :  { %1961 = vpow2.f32 %v615_v38  ;;  %799 = vmatpush.msrb.mxu3 %v779_v36  ;;  %v742_v36 = vld [vmem:[#allocation14 + $0x18] sm:$0xff] }
 0x307   :  { %1963 = vpow2.f32 %v613_v39  ;;  %v780_v39 = vunpack.c.h.bf16 %v751_v17 }
 0x309   :  { %822 = vmatpush.msra.mxu0 %v780_v39  ;;  %v741_v39 = vld [vmem:[#allocation14 + $0x10] sm:$0xff] }
 0x30b   :  { %v2619_v40 = vpop.eup %1959 }
 0x30c   :  { %v2621_v41 = vpop.eup %1961  ;;  %v621_v45 = vmul.f32 %v2619_v40, %v2588_v34 }
 0x30d   :  { %v2623_v43 = vpop.eup %1963  ;;  %v620_v44 = vmul.f32 %v2621_v41, %v2577_v31 }
 0x30e   :  { %v619_v46 = vmul.f32 %v2623_v43, %v2565_v27  ;;  %v625_v50 = vsel %vm476_vm4, %v621_v45, 0.0 }
 0x30f   :  { %v623_v47 = vsel %vm476_vm4, %v620_v44, 0.0  ;;  %v749_v44 = vld [vmem:[#allocation14 + $0x50] sm:$0xff] }
 0x310   :  { %v622_v48 = vsel %vm476_vm4, %v619_v46, 0.0  ;;  %v777_v46 = vunpack.c.l.bf16 %v750_v28 }
 0x311   :  { %v624_v49 = vadd.f32 %v623_v47, %v622_v48 }
 0x312   :  { %800 = vmatpush.msrb.mxu3 %v777_v46  ;;  %v740_v46 = vld [vmem:[#allocation14 + $0x8] sm:$0xff] }
 0x313   :  { %v626_v51 = vadd.f32 %v625_v50, %v624_v49  ;;  %v778_v50 = vunpack.c.h.bf16 %v750_v28  ;;  %v743_v28 = vld [vmem:[#allocation14 + $0x20] sm:$0xff] }
 0x314   :  { %v764_v33 = vunpack.c.h.bf16 %v743_v28 }
 0x315   :  { %v627_v53 = vrot.slane %v626_v51, 4  ;;  %823 = vmatpush.msra.mxu0 %v778_v50 }
 0x317   :  { %v628_v54 = vadd.f32 %v627_v53, %v626_v51  ;;  %v748_v51 = vld [vmem:[#allocation14 + $0x48] sm:$0xff] }
 0x319   :  { %v629_v55 = vrot.slane %v628_v54, 2 }
 0x31b   :  { %v630_v56 = vadd.f32 %v629_v55, %v628_v54 }
 0x31d   :  { %v631_v57 = vrot.slane %v630_v56, 1 }
 0x31f   :  { %v632_v58 = vadd.f32 %v631_v57, %v630_v56  ;;  %v775_v56 = vunpack.c.l.bf16 %v749_v44 }
 0x321   :  { %v633_v59 = vadd.f32 1e-16, %v632_v58  ;;  %801 = vmatpush.msrb.mxu3 %v775_v56 }
 0x323   :  { %v636_v60 = vmul.f32 %v633_v59, %v2588_v34  ;;  %v635_v61 = vmul.f32 %v2577_v31, %v633_v59  ;;  %v634_v0 = vmul.f32 %v2565_v27, %v633_v59  ;;  %v776_v59 = vunpack.c.h.bf16 %v749_v44 }
 0x324   :  { %v759_v44 = vunpack.c.l.bf16 %v741_v39 }
 0x325   :  { %v643_v62 = vsel %vm476_vm4, %v636_v60, 0.0  ;;  %v640_v63 = vsel %vm476_vm4, %v635_v61, 0.0  ;;  %v637_v1 = vsel %vm476_vm4, %v634_v0, 0.0  ;;  %824 = vmatpush.msra.mxu0 %v776_v59 }
 0x326   :  { %644 = vadd.xlane.f32.xlu2 %v643_v62  ;;  %641 = vadd.xlane.f32.xlu1 %v640_v63  ;;  %v773_v63 = vunpack.c.l.bf16 %v748_v51 }
 0x328   :  { %802 = vmatpush.msrb.mxu3 %v773_v63 }
 0x32e   :  { %638 = vadd.xlane.f32.xlu2 %v637_v1 }
 0x399   :  { %v645_v2 = vpop.xlane.xlu2 %644  ;;  %v642_v3 = vpop.xlane.xlu1 %641 }
 0x39a   :  { %1965 = vrcp.f32 %v645_v2  ;;  %v687_v19 = vand.u32 2147483648, %v645_v2  ;;  %v672_v20 = vand.u32 2147483648, %v642_v3  ;;  %v685_v24 = vand.u32 2147483647, %v645_v2 }
 0x39b   :  { %1967 = vrcp.f32 %v642_v3  ;;  %v670_v38 = vand.u32 2147483647, %v642_v3  ;;  %vm681_vm13 = vweird.f32 %v645_v2  ;;  %vm666_vm14 = vweird.f32 %v642_v3 }
 0x39c   :  { %vm686_vm0 = vcmp.eq.f32.partialorder %v685_v24, 8.507059e+37  ;;  %v688_v48 = vor.u32 1.1754944e-38, %v687_v19  ;;  %v673_v55 = vor.u32 1.1754944e-38, %v672_v20  ;;  %v745_v20 = vld [vmem:[#allocation14 + $0x30] sm:$0xff]  ;;  %v744_v24 = vld [vmem:[#allocation14 + $0x28] sm:$0xff] }
 0x39d   :  { %vm671_vm5 = vcmp.eq.f32.partialorder %v670_v38, 8.507059e+37  ;;  %v767_v22 = vunpack.c.l.bf16 %v745_v20  ;;  %v765_v25 = vunpack.c.l.bf16 %v744_v24  ;;  %v766_v26 = vunpack.c.h.bf16 %v744_v24 }
 0x39e   :  { %v762_v38 = vunpack.c.h.bf16 %v742_v36 }
 0x3a0   :  { %v1966_v4 = vpop.eup %1965 }
 0x3a1   :  { %v1968_v7 = vpop.eup %1967  ;;  %v677_v10 = vmul.f32 %v1966_v4, %v645_v2  ;;  %v2640_v12 = vpop.xlane.xlu2 %638  ;;  %vm682_vm11 = vweird.f32 %v1966_v4  ;;  %v774_v2 = vunpack.c.h.bf16 %v748_v51 }
 0x3a2   :  { %v662_v16 = vmul.f32 %v1968_v7, %v642_v3  ;;  %1969 = vrcp.f32 %v2640_v12  ;;  %vm667_vm12 = vweird.f32 %v1968_v7  ;;  %vm683_vm15 = vmor %vm681_vm13, %vm682_vm11  ;;  %v657_v0 = vand.u32 2147483648, %v2640_v12 }
 0x3a3   :  { %v678_v18 = vsub.f32 1.0, %v677_v10  ;;  %vm668_vm1 = vmor %vm666_vm14, %vm667_vm12  ;;  %v655_v5 = vand.u32 2147483647, %v2640_v12  ;;  %vm651_vm7 = vweird.f32 %v2640_v12  ;;  %825 = vmatpush.msra.mxu0 %v774_v2  ;;  %vm697_vm13 = vcmask 195584  }
 0x3a4   :  { %v663_v23 = vsub.f32 1.0, %v662_v16  ;;  %v747_v16 = vld [vmem:[#allocation14 + $0x40] sm:$0xff] }
 0x3a5   :  { %v679_v30 = vmul.f32 %v1966_v4, %v678_v18  ;;  %vm656_vm12 = vcmp.eq.f32.partialorder %v655_v5, 8.507059e+37  ;;  %v772_v17 = vunpack.c.h.bf16 %v747_v16  ;;  %v746_v18 = vld [vmem:[#allocation14 + $0x38] sm:$0xff] }
 0x3a6   :  { %v664_v37 = vmul.f32 %v1968_v7, %v663_v23  ;;  %v770_v19 = vunpack.c.h.bf16 %v746_v18  ;;  %v768_v23 = vunpack.c.h.bf16 %v745_v20 }
 0x3a7   :  { %v680_v45 = vadd.f32 %v1966_v4, %v679_v30  ;;  %826 = vmatpush.msra.mxu0 %v772_v17  ;;  %v763_v30 = vunpack.c.l.bf16 %v743_v28 }
 0x3a8   :  { %v1970_v47 = vpop.eup %1969  ;;  %v665_v49 = vadd.f32 %v1968_v7, %v664_v37  ;;  %v761_v37 = vunpack.c.l.bf16 %v742_v36  ;;  %v957_v36 = vld [vmem:[%s2988_s18] sm:$0x1] }
 0x3a9   :  { %v647_v53 = vmul.f32 %v1970_v47, %v2640_v12  ;;  %v684_v54 = vsel %vm683_vm15, %v1966_v4, %v680_v45  ;;  %vm652_vm6 = vweird.f32 %v1970_v47  ;;  %827 = vmatpush.msra.mxu0 %v770_v19  ;;  %v760_v45 = vunpack.c.h.bf16 %v741_v39 }
 0x3aa   :  { %v689_v57 = vsel %vm686_vm0, %v688_v48, %v684_v54  ;;  %v669_v58 = vsel %vm668_vm1, %v1968_v7, %v665_v49  ;;  %vm653_vm11 = vmor %vm651_vm7, %vm652_vm6  ;;  %v658_v7 = vor.u32 1.1754944e-38, %v657_v0  ;;  %v758_v48 = vunpack.c.h.bf16 %v740_v46  ;;  %v739_v49 = vld [vmem:[#allocation14] sm:$0xff] }
 0x3ab   :  { %v648_v60 = vsub.f32 1.0, %v647_v53  ;;  %v690_v61 = vmul.f32 %v2619_v40, %v689_v57  ;;  %v674_v62 = vsel %vm671_vm5, %v673_v55, %v669_v58  ;;  %828 = vmatpush.msra.mxu0 %v768_v23  ;;  %v755_v50 = vunpack.c.l.bf16 %v739_v49  ;;  %v694_v53 = vld [vmem:[%s2984_s14] sm:$0x1] }
 0x3ac   :  { %v675_v1 = vmul.f32 %v2621_v41, %v674_v62  ;;  %v756_v51 = vunpack.c.h.bf16 %v739_v49  ;;  %v695_v54 = vunpack.c.l.bf16 %v694_v53  ;;  %v958_v39 = vunpack.c.l.bf16 %v957_v36 }
 0x3ad   :  { %v649_v3 = vmul.f32 %v1970_v47, %v648_v60  ;;  %v693_v4 = vmul.f32 %v690_v61, %v2598_v52  ;;  %v256_v52 = vld [vmem:[%s3026_s10] sm:$0xf]  ;;  %829 = vmatpush.msra.mxu0 %v766_v26 }
 0x3ae   :  { %v692_v40 = vmul.f32 %v675_v1, %v2595_v42  ;;  %v2657_v14 = vunpack.c.l.bf16 %v256_v52  ;;  %v257_v42 = vld [vmem:[%s3026_s10 + $0x4] sm:$0x1]  ;;  %v696_v55 = vperm.slane %v695_v54, 0 }
 0x3af   :  { %717 = vmatpush.msrb.mxu2 %v693_v4  ;;  %v650_v6 = vadd.f32 %v1970_v47, %v649_v3  ;;  %v2665_v15 = vunpack.c.l.bf16 %v257_v42  ;;  %830 = vmatpush.msra.mxu0 %v764_v33 }
 0x3b1   :  { %718 = vmatpush.msrb.mxu2 %v692_v40  ;;  %v654_v41 = vsel %vm653_vm11, %v1970_v47, %v650_v6  ;;  %831 = vmatpush.msra.mxu0 %v762_v38  ;;  %v757_v47 = vunpack.c.l.bf16 %v740_v46  ;;  %v1938_v40 = vld [vmem:[#allocation16 + $0x18] sm:$0xff]   ;;  %v959_v46 = vperm.slane %v958_v39, 0 }
 0x3b2   :  { %v659_v10 = vsel %vm656_vm12, %v658_v7, %v654_v41  ;;  %v1930_v6 = vunpack.c.h.bf16 %v1938_v40  ;;  %v1929_v7 = vunpack.c.l.bf16 %v1938_v40  ;;  %v1937_v41 = vld [vmem:[#allocation16 + $0x10] sm:$0xff]  }
 0x3b3   :  { %v660_v13 = vmul.f32 %v2623_v43, %v659_v10  ;;  %v771_v43 = vunpack.c.l.bf16 %v747_v16  ;;  %832 = vmatpush.msra.mxu0 %v760_v45  ;;  %v1926_v52 = vunpack.c.h.bf16 %v1937_v41  ;;  %v1925_v10 = vunpack.c.l.bf16 %v1937_v41  ;;  %v1916_v16 = vld [vmem:[#allocation16] sm:$0xff]  }
 0x3b4   :  { %v1917_v17 = vunpack.c.l.bf16 %v1916_v16 }
 0x3b5   :  { %v691_v12 = vmul.f32 %v660_v13, %v2592_v35  ;;  %803 = vmatpush.msrb.mxu3 %v771_v43  ;;  %v769_v35 = vunpack.c.l.bf16 %v746_v18  ;;  %833 = vmatpush.msra.mxu0 %v758_v48  ;;  %v1936_v13 = vld [vmem:[#allocation16 + $0x8] sm:$0xff]   ;;  %v1918_v43 = vunpack.c.h.bf16 %v1916_v16  ;;  %v787_v18 = vld [vmem:[%s2986_s16] sm:$0x3] }
 0x3b6   :  { %v1921_v42 = vunpack.c.l.bf16 %v1936_v13 }
 0x3b7   :  { %719 = vmatpush.msrb.mxu2 %v691_v12  ;;  %804 = vmatpush.msrb.mxu3 %v769_v35  ;;  %v1922_v12 = vunpack.c.h.bf16 %v1936_v13  ;;  %v788_v35 = vunpack.c.l.bf16 %v787_v18 }
 0x3b8   :  { %1830 = vmatmul.msk.f32.vlgmr.msrb.gmra.mxu2 %vm697_vm13, %v2657_v14  ;;  %834 = vmatpush.msra.mxu0 %v756_v51 }
 0x3b9   :  { %805 = vmatpush.msrb.mxu3 %v767_v22  ;;  %866 = vmatpush.msra.mxu2 %v1930_v6  ;;  %v791_v20 = vperm.slane %v788_v35, 2 }
 0x3bb   :  { %806 = vmatpush.msrb.mxu3 %v765_v25  ;;  %867 = vmatpush.msra.mxu2 %v1929_v7  ;;  %v795_v23 = vperm.slane %v791_v20, 0  ;;  %v790_v25 = vperm.slane %v788_v35, 0 }
 0x3bd   :  { %807 = vmatpush.msrb.mxu3 %v763_v30  ;;  %868 = vmatpush.msra.mxu2 %v1926_v52 }
 0x3bf   :  { %808 = vmatpush.msrb.mxu3 %v761_v37  ;;  %869 = vmatpush.msra.mxu2 %v1925_v10 }
 0x3c0   :  { %1831 = vmatmul.msk.f32.gmra.mxu2 %vm697_vm13, %v2665_v15 }
 0x3c1   :  { %809 = vmatpush.msrb.mxu3 %v759_v44  ;;  %870 = vmatpush.msra.mxu2 %v1922_v12 }
 0x3c3   :  { %810 = vmatpush.msrb.mxu3 %v757_v47  ;;  %871 = vmatpush.msra.mxu2 %v1921_v42 }
 0x3c5   :  { %811 = vmatpush.msrb.mxu3 %v755_v50  ;;  %872 = vmatpush.msra.mxu2 %v1918_v43 }
 0x3c7   :  { %873 = vmatpush.msra.mxu2 %v1917_v17 }
 0x3c8   :  { %1834 = vmatmul.msk.f32.vlgmr.msra.gmra.mxu2 %vm372_vm2, %v2539_v8  ;;  %v794_v8 = vperm.slane %v790_v25, 0 }
 0x3d0   :  { %1835 = vmatmul.msk.f32.gmra.mxu2 %vm372_vm2, %v2543_v9 }
 0x3d8   :  { %1836 = vmatmul.msk.f32.gmra.mxu2 %vm372_vm2, %v2550_v11 }
 0x43b   :  { %v721_v56 = vpop.f32.mrf.mxu2 }
 0x43c   :  { %v722_v57 = vadd.f32 %v721_v56, %v696_v55 }
 0x43e   :  { %v729_v58 = vmin.f32 %v722_v57, 0.0  ;;  %vm727_vm14 = vcmp.gt.f32.partialorder %v722_v57, 0.0 }
 0x440   :  { %v731_v59 = vmul.f32 1.442695, %v729_v58 }
 0x442   :  { %1971 = vpow2.f32 %v731_v59 }
 0x443   :  { %v724_v60 = vpop.f32.mrf.mxu2 }
 0x444   :  { %v725_v61 = vadd.f32 %v724_v60, %v696_v55 }
 0x446   :  { %v730_v62 = vmin.f32 %v725_v61, 0.0  ;;  %vm728_vm15 = vcmp.gt.f32.partialorder %v725_v61, 0.0 }
 0x448   :  { %v1972_v63 = vpop.eup %1971  ;;  %v733_v0 = vmul.f32 1.442695, %v730_v62 }
 0x449   :  { %v1832_v1 = vadd.f32 -1.0, %v1972_v63 }
 0x44a   :  { %1973 = vpow2.f32 %v733_v0 }
 0x44b   :  { %v737_v2 = vsel %vm727_vm14, %v722_v57, %v1832_v1  ;;  %v875_v11 = vpop.f32.mrf.mxu2 }
 0x44c   :  { %812 = vmatmul.f32.vlgmr.msrb.gmra.mxu3 %v737_v2  ;;  %835 = vmatmul.f32.vlgmr.msra.gmra.mxu0 %v737_v2 }
 0x450   :  { %v1974_v3 = vpop.eup %1973 }
 0x451   :  { %v1833_v4 = vadd.f32 -1.0, %v1974_v3 }
 0x453   :  { %v738_v5 = vsel %vm728_vm15, %v725_v61, %v1833_v4  ;;  %v878_v48 = vpop.f32.mrf.mxu2 }
 0x454   :  { %815 = vmatmul.f32.gmra.mxu3 %v738_v5  ;;  %838 = vmatmul.f32.gmra.mxu0 %v738_v5 }
 0x45b   :  { %v881_v57 = vpop.f32.mrf.mxu2 }
 0x4c9   :  { %v836_v19 = vpop.f32.mrf.mxu0 }
 0x4ca   :  { %v837_v28 = vadd.f32 %v836_v19, %v795_v23 }
 0x4cf   :  { %v813_v22 = vpop.f32.mrf.mxu3 }
 0x4d0   :  { %v814_v33 = vadd.f32 %v813_v22, %v794_v8 }
 0x4d1   :  { %v839_v24 = vpop.f32.mrf.mxu0 }
 0x4d2   :  { %v840_v26 = vadd.f32 %v839_v24, %v795_v23 }
 0x4d4   :  { %1841 = vmatpush.msk.msra.mxu3 %vm486_vm3, %v840_v26 }
 0x4d6   :  { %931 = vmatpush.msra.mxu3 %v837_v28 }
 0x4d7   :  { %v816_v9 = vpop.f32.mrf.mxu3  ;;  %1842 = vmatmul.msk.f32.vlgmr.msra.gmra.mxu3 %vm476_vm4, %v2565_v27 }
 0x4d8   :  { %v817_v30 = vadd.f32 %v816_v9, %v794_v8 }
 0x4da   :  { %1837 = vmatpush.msk.msra.mxu1 %vm486_vm3, %v817_v30 }
 0x4dc   :  { %902 = vmatpush.msra.mxu1 %v814_v33 }
 0x4dd   :  { %1838 = vmatmul.msk.f32.vlgmr.msra.gmra.mxu1 %vm476_vm4, %v2557_v21 }
 0x4df   :  { %1843 = vmatmul.msk.f32.gmra.mxu3 %vm476_vm4, %v2577_v31 }
 0x4e5   :  { %1839 = vmatmul.msk.f32.gmra.mxu1 %vm476_vm4, %v2568_v29 }
 0x4e7   :  { %1844 = vmatmul.msk.f32.gmra.mxu3 %vm476_vm4, %v2588_v34 }
 0x4ed   :  { %1840 = vmatmul.msk.f32.gmra.mxu1 %vm476_vm4, %v2579_v32 }
 0x55a   :  { %v2698_v37 = vpop.f32.mrf.mxu1  ;;  %v933_v38 = vpop.f32.mrf.mxu3 }
 0x55b   :  { %v942_v44 = vadd.f32 %v933_v38, %v2698_v37 }
 0x55d   :  { %v945_v45 = vadd.f32 %v942_v44, %v875_v11 }
 0x55f   :  { %v951_v47 = vmul.f32 0.2, %v945_v45  ;;  %vm948_vm0 = vcmp.gt.f32.partialorder %v945_v45, 0.0 }
 0x561   :  { %v954_v49 = vsel %vm948_vm0, %v945_v45, %v951_v47 }
 0x562   :  { %v2701_v50 = vpop.f32.mrf.mxu1  ;;  %v936_v51 = vpop.f32.mrf.mxu3  ;;  %v960_v53 = vmul.f32 %v959_v46, %v954_v49 }
 0x563   :  { %v943_v54 = vadd.f32 %v936_v51, %v2701_v50 }
 0x564   :  { %963 = vadd.xlane.f32.xlu1 %v960_v53 }
 0x565   :  { %v946_v55 = vadd.f32 %v943_v54, %v878_v48 }
 0x567   :  { %v952_v56 = vmul.f32 0.2, %v946_v55  ;;  %vm949_vm1 = vcmp.gt.f32.partialorder %v946_v55, 0.0 }
 0x569   :  { %v955_v58 = vsel %vm949_vm1, %v946_v55, %v952_v56 }
 0x56a   :  { %v2704_v59 = vpop.f32.mrf.mxu1  ;;  %v939_v60 = vpop.f32.mrf.mxu3  ;;  %v961_v61 = vmul.f32 %v959_v46, %v955_v58 }
 0x56b   :  { %v944_v62 = vadd.f32 %v939_v60, %v2704_v59 }
 0x56c   :  { %965 = vadd.xlane.f32.xlu2 %v961_v61 }
 0x56d   :  { %v947_v63 = vadd.f32 %v944_v62, %v881_v57 }
 0x56f   :  { %v953_v0 = vmul.f32 0.2, %v947_v63  ;;  %vm950_vm5 = vcmp.gt.f32.partialorder %v947_v63, 0.0 }
 0x571   :  { %v956_v1 = vsel %vm950_vm5, %v947_v63, %v953_v0 }
 0x572   :  { %v962_v2 = vmul.f32 %v959_v46, %v956_v1 }
 0x574   :  { %967 = vadd.xlane.f32.xlu1 %v962_v2 }
 0x5d7   :  { %v964_v3 = vpop.xlane.xlu1 %963 }
 0x5d8   :  { %v969_v40 = vsel %vm581_vm9, %v964_v3, -1e+30 }
 0x5d9   :  { %v972_v7 = vsel %vm476_vm4, %v969_v40, -inf }
 0x5df   :  { %v966_v4 = vpop.xlane.xlu2 %965 }
 0x5e0   :  { %v970_v5 = vsel %vm582_vm8, %v966_v4, -1e+30 }
 0x5e1   :  { %v973_v6 = vsel %vm476_vm4, %v970_v5, -inf }
 0x5e2   :  { %v975_v52 = vmax.f32 %v972_v7, %v973_v6 }
 0x5e7   :  { %v968_v41 = vpop.xlane.xlu1 %967 }
 0x5e8   :  { %v971_v10 = vsel %vm583_vm10, %v968_v41, -1e+30 }
 0x5e9   :  { %v974_v13 = vsel %vm476_vm4, %v971_v10, -inf  ;;  %v1145_v10 = vld [vmem:[#allocation17 + $0xe0] sm:$0xff] }
 0x5ea   :  { %v976_v12 = vmax.f32 %v975_v52, %v974_v13  ;;  %v2752_v52 = vld [vmem:[#allocation17 + $0xf8] sm:$0xff] }
 0x5ec   :  { %v977_v42 = vrot.slane %v976_v12, 4 }
 0x5ee   :  { %v978_v16 = vmax.f32 %v976_v12, %v977_v42  ;;  %v2755_v12 = vld [vmem:[#allocation17 + $0xe8] sm:$0xff] }
 0x5f0   :  { %v979_v43 = vrot.slane %v978_v16, 2 }
 0x5f2   :  { %v980_v17 = vmax.f32 %v978_v16, %v979_v43 }
 0x5f4   :  { %v981_v18 = vrot.slane %v980_v17, 1 }
 0x5f6   :  { %v982_v35 = vmax.f32 %v980_v17, %v981_v18  ;;  %v1211_v17 = vunpack.c.l.bf16 %v2752_v52  ;;  %v1143_v18 = vld [vmem:[#allocation17 + $0xd0] sm:$0xff] }
 0x5f8   :  { %v984_v19 = vmul.f32 %v2577_v31, %v982_v35  ;;  %v983_v20 = vmul.f32 %v2565_v27, %v982_v35  ;;  %v985_v24 = vmul.f32 %v982_v35, %v2588_v34  ;;  %v2759_v35 = vld [vmem:[#allocation17 + $0xd8] sm:$0xff]  ;;  %1274 = vmatpush.msrb.mxu3 %v1211_v17 }
 0x5fa   :  { %v989_v22 = vsel %vm476_vm4, %v984_v19, 0.0  ;;  %v986_v23 = vsel %vm476_vm4, %v983_v20, 0.0  ;;  %v992_v25 = vsel %vm476_vm4, %v985_v24, 0.0  ;;  %v1205_v19 = vunpack.c.l.bf16 %v1145_v10 }
 0x5fb   :  { %990 = vadd.xlane.f32.xlu1 %v989_v22  ;;  %987 = vadd.xlane.f32.xlu2 %v986_v23  ;;  %v1206_v20 = vunpack.c.h.bf16 %v1145_v10  ;;  %v1141_v22 = vld [vmem:[#allocation17 + $0xc0] sm:$0xff] }
 0x603   :  { %993 = vadd.xlane.f32.xlu2 %v992_v25  ;;  %v1207_v25 = vunpack.c.l.bf16 %v2755_v12 }
 0x605   :  { %1275 = vmatpush.msrb.mxu3 %v1207_v25 }
 0x66e   :  { %v991_v26 = vpop.xlane.xlu1 %990  ;;  %v988_v28 = vpop.xlane.xlu2 %987 }
 0x66f   :  { %v996_v8 = vsub.f32 %v966_v4, %v991_v26  ;;  %v995_v9 = vsub.f32 %v964_v3, %v988_v28  ;;  %v1201_v26 = vunpack.c.l.bf16 %v1143_v18  ;;  %v1202_v28 = vunpack.c.h.bf16 %v1143_v18 }
 0x671   :  { %v1000_v30 = vmul.f32 1.442695, %v996_v8  ;;  %v998_v33 = vmul.f32 1.442695, %v995_v9  ;;  %v2767_v8 = vld [vmem:[#allocation17 + $0xc8] sm:$0xff] }
 0x673   :  { %1975 = vpow2.f32 %v1000_v30 }
 0x674   :  { %1977 = vpow2.f32 %v998_v33 }
 0x676   :  { %v994_v11 = vpop.xlane.xlu2 %993 }
 0x677   :  { %v997_v36 = vsub.f32 %v968_v41, %v994_v11  ;;  %v1147_v41 = vld [vmem:[#allocation17 + $0xf0] sm:$0xff] }
 0x678   :  { %v1209_v16 = vunpack.c.l.bf16 %v1147_v41  ;;  %v1210_v43 = vunpack.c.h.bf16 %v1147_v41 }
 0x679   :  { %v2722_v38 = vpop.eup %1975  ;;  %v1002_v39 = vmul.f32 1.442695, %v997_v36  ;;  %v1203_v36 = vunpack.c.l.bf16 %v2759_v35 }
 0x67a   :  { %v2724_v44 = vpop.eup %1977  ;;  %v1005_v45 = vmul.f32 %v2722_v38, %v2577_v31  ;;  %1228 = vmatpush.msrb.mxu1 %v1209_v16  ;;  %1251 = vmatpush.msrb.mxu0 %v1210_v43 }
 0x67b   :  { %1979 = vpow2.f32 %v1002_v39  ;;  %v1004_v46 = vmul.f32 %v2724_v44, %v2565_v27  ;;  %v1139_v39 = vld [vmem:[#allocation17 + $0xb0] sm:$0xff]  ;;  %1276 = vmatpush.msrb.mxu3 %v1203_v36 }
 0x67c   :  { %v1008_v47 = vsel %vm476_vm4, %v1005_v45, 0.0  ;;  %1229 = vmatpush.msrb.mxu1 %v1205_v19  ;;  %1252 = vmatpush.msrb.mxu0 %v1206_v20 }
 0x67d   :  { %v1007_v48 = vsel %vm476_vm4, %v1004_v46, 0.0 }
 0x67e   :  { %v1009_v53 = vadd.f32 %v1008_v47, %v1007_v48  ;;  %v1197_v48 = vunpack.c.l.bf16 %v1141_v22  ;;  %1230 = vmatpush.msrb.mxu1 %v1201_v26  ;;  %1253 = vmatpush.msrb.mxu0 %v1202_v28 }
 0x680   :  { %1231 = vmatpush.msrb.mxu1 %v1197_v48 }
 0x681   :  { %v2732_v49 = vpop.eup %1979 }
 0x682   :  { %v1006_v51 = vmul.f32 %v2732_v49, %v2588_v34 }
 0x684   :  { %v1010_v54 = vsel %vm476_vm4, %v1006_v51, 0.0  ;;  %v1198_v51 = vunpack.c.h.bf16 %v1141_v22 }
 0x685   :  { %v1011_v55 = vadd.f32 %v1010_v54, %v1009_v53  ;;  %v2783_v53 = vld [vmem:[#allocation17 + $0xb8] sm:$0xff] }
 0x686   :  { %1254 = vmatpush.msrb.mxu0 %v1198_v51 }
 0x687   :  { %v1012_v56 = vrot.slane %v1011_v55, 4 }
 0x689   :  { %v1013_v57 = vadd.f32 %v1012_v56, %v1011_v55 }
 0x68b   :  { %v1014_v58 = vrot.slane %v1013_v57, 2 }
 0x68d   :  { %v1015_v60 = vadd.f32 %v1014_v58, %v1013_v57  ;;  %v1199_v57 = vunpack.c.l.bf16 %v2767_v8  ;;  %v1137_v58 = vld [vmem:[#allocation17 + $0xa0] sm:$0xff] }
 0x68e   :  { %v1189_v41 = vunpack.c.l.bf16 %v1137_v58  ;;  %v1190_v10 = vunpack.c.h.bf16 %v1137_v58  ;;  %v1129_v58 = vld [vmem:[#allocation17 + $0x60] sm:$0xff] }
 0x68f   :  { %v1016_v61 = vrot.slane %v1015_v60, 1  ;;  %1277 = vmatpush.msrb.mxu3 %v1199_v57 }
 0x691   :  { %v1017_v62 = vadd.f32 %v1016_v61, %v1015_v60 }
 0x693   :  { %v1018_v63 = vadd.f32 1e-16, %v1017_v62  ;;  %v1193_v62 = vunpack.c.l.bf16 %v1139_v39 }
 0x695   :  { %v1021_v0 = vmul.f32 %v1018_v63, %v2588_v34  ;;  %v1020_v1 = vmul.f32 %v2577_v31, %v1018_v63  ;;  %v1019_v2 = vmul.f32 %v2565_v27, %v1018_v63  ;;  %v1194_v63 = vunpack.c.h.bf16 %v1139_v39  ;;  %1232 = vmatpush.msrb.mxu1 %v1193_v62 }
 0x696   :  { %v1174_v62 = vunpack.c.h.bf16 %v1129_v58 }
 0x697   :  { %v1028_v3 = vsel %vm476_vm4, %v1021_v0, 0.0  ;;  %v1025_v4 = vsel %vm476_vm4, %v1020_v1, 0.0  ;;  %v1022_v5 = vsel %vm476_vm4, %v1019_v2, 0.0  ;;  %v2790_v0 = vld [vmem:[#allocation17 + $0xa8] sm:$0xff]  ;;  %1255 = vmatpush.msrb.mxu0 %v1194_v63  ;;  %1233 = vmatpush.msrb.mxu1 %v1189_v41 }
 0x698   :  { %1029 = vadd.xlane.f32.xlu1 %v1028_v3  ;;  %1026 = vadd.xlane.f32.xlu2 %v1025_v4  ;;  %v1195_v3 = vunpack.c.l.bf16 %v2783_v53  ;;  %v1135_v4 = vld [vmem:[#allocation17 + $0x90] sm:$0xff]  ;;  %v1191_v43 = vunpack.c.l.bf16 %v2790_v0 }
 0x699   :  { %1023 = vadd.xlane.f32.xlu0 %v1022_v5  ;;  %v1185_v19 = vunpack.c.l.bf16 %v1135_v4  ;;  %v1186_v20 = vunpack.c.h.bf16 %v1135_v4  ;;  %1256 = vmatpush.msrb.mxu0 %v1190_v10  ;;  %v1125_v10 = vld [vmem:[#allocation17 + $0x40] sm:$0xff] }
 0x69a   :  { %1278 = vmatpush.msrb.mxu3 %v1195_v3 }
 0x69b   :  { %1234 = vmatpush.msrb.mxu1 %v1185_v19  ;;  %1257 = vmatpush.msrb.mxu0 %v1186_v20  ;;  %v1124_v19 = vld [vmem:[#allocation17 + $0x38] sm:$0xff] }
 0x69c   :  { %1279 = vmatpush.msrb.mxu3 %v1191_v43 }
 0x70b   :  { %v2743_v40 = vpop.xlane.xlu1 %1029  ;;  %v2745_v6 = vpop.xlane.xlu2 %1026 }
 0x70c   :  { %1981 = vrcp.f32 %v2743_v40  ;;  %v2748_v7 = vpop.xlane.xlu0 %1023  ;;  %v1070_v13 = vand.u32 2147483647, %v2743_v40  ;;  %v1072_v42 = vand.u32 2147483648, %v2743_v40  ;;  %vm1066_vm6 = vweird.f32 %v2743_v40 }
 0x70d   :  { %1983 = vrcp.f32 %v2745_v6  ;;  %vm1051_vm7 = vweird.f32 %v2745_v6  ;;  %v1055_v24 = vand.u32 2147483647, %v2745_v6  ;;  %v1057_v11 = vand.u32 2147483648, %v2745_v6 }
 0x70e   :  { %1985 = vrcp.f32 %v2748_v7  ;;  %vm2773_vm11 = vcmp.eq.f32.partialorder %v1070_v13, 8.507059e+37  ;;  %v1073_v46 = vor.u32 1.1754944e-38, %v1072_v42  ;;  %v1040_v56 = vand.u32 2147483647, %v2748_v7  ;;  %v1136_v13 = vld [vmem:[#allocation17 + $0x98] sm:$0xff] }
 0x70f   :  { %v1042_v61 = vand.u32 2147483648, %v2748_v7  ;;  %vm1036_vm1 = vweird.f32 %v2748_v7  ;;  %v1187_v26 = vunpack.c.l.bf16 %v1136_v13 }
 0x711   :  { %1280 = vmatpush.msrb.mxu3 %v1187_v26  ;;  %v1121_v26 = vld [vmem:[#allocation17 + $0x20] sm:$0xff] }
 0x712   :  { %v2762_v23 = vpop.eup %1981 }
 0x713   :  { %v2769_v9 = vpop.eup %1983  ;;  %v1062_v30 = vmul.f32 %v2762_v23, %v2743_v40  ;;  %vm1067_vm12 = vweird.f32 %v2762_v23  ;;  %v1058_v40 = vor.u32 1.1754944e-38, %v1057_v11 }
 0x714   :  { %v2779_v45 = vpop.eup %1985  ;;  %v1047_v47 = vmul.f32 %v2769_v9, %v2745_v6  ;;  %vm1052_vm14 = vweird.f32 %v2769_v9  ;;  %vm2805_vm0 = vmor %vm1066_vm6, %vm1067_vm12  ;;  %vm1056_vm6 = vcmp.eq.f32.partialorder %v1055_v24, 8.507059e+37 }
 0x715   :  { %v1063_v54 = vsub.f32 1.0, %v1062_v30  ;;  %v1032_v55 = vmul.f32 %v2779_v45, %v2748_v7  ;;  %vm1037_vm15 = vweird.f32 %v2779_v45  ;;  %vm1053_vm5 = vmor %vm1051_vm7, %vm1052_vm14  ;;  %v1043_v7 = vor.u32 1.1754944e-38, %v1042_v61 }
 0x716   :  { %v1048_v60 = vsub.f32 1.0, %v1047_v47  ;;  %vm1038_vm12 = vmor %vm1036_vm1, %vm1037_vm15  ;;  %vm1041_vm7 = vcmp.eq.f32.partialorder %v1040_v56, 8.507059e+37  ;;  %v1173_v61 = vunpack.c.l.bf16 %v1129_v58 }
 0x717   :  { %v1064_v1 = vmul.f32 %v2762_v23, %v1063_v54  ;;  %v1033_v2 = vsub.f32 1.0, %v1032_v55  ;;  %v1132_v54 = vld [vmem:[#allocation17 + $0x78] sm:$0xff] }
 0x718   :  { %v1049_v5 = vmul.f32 %v2769_v9, %v1048_v60  ;;  %v1179_v56 = vunpack.c.l.bf16 %v1132_v54  ;;  %v1180_v57 = vunpack.c.h.bf16 %v1132_v54  ;;  %v1130_v60 = vld [vmem:[#allocation17 + $0x68] sm:$0xff]  ;;  %v1324_v54 = vld [vmem:[#allocation19 + $0x20] sm:$0xff] }
 0x719   :  { %v1065_v42 = vadd.f32 %v2762_v23, %v1064_v1  ;;  %v1034_v16 = vmul.f32 %v2779_v45, %v1033_v2  ;;  %v1175_v63 = vunpack.c.l.bf16 %v1130_v60  ;;  %v1127_v1 = vld [vmem:[#allocation17 + $0x50] sm:$0xff]  ;;  %v1128_v2 = vld [vmem:[#allocation17 + $0x58] sm:$0xff]  ;;  %v1336_v58 = vunpack.c.l.bf16 %v1324_v54 }
 0x71a   :  { %v1050_v18 = vadd.f32 %v2769_v9, %v1049_v5  ;;  %v1169_v3 = vunpack.c.l.bf16 %v1127_v1  ;;  %v1170_v4 = vunpack.c.h.bf16 %v1127_v1  ;;  %v1171_v5 = vunpack.c.l.bf16 %v1128_v2 }
 0x71b   :  { %v1069_v22 = vsel %vm2805_vm0, %v2762_v23, %v1065_v42  ;;  %v1035_v25 = vadd.f32 %v2779_v45, %v1034_v16  ;;  %v1172_v41 = vunpack.c.h.bf16 %v1128_v2  ;;  %v1165_v42 = vunpack.c.l.bf16 %v1125_v10  ;;  %v1321_v2 = vld [vmem:[#allocation19 + $0x8] sm:$0xff] }
 0x71c   :  { %v1074_v23 = vsel %vm2773_vm11, %v1073_v46, %v1069_v22  ;;  %v1054_v28 = vsel %vm1053_vm5, %v2769_v9, %v1050_v18  ;;  %v1212_v46 = vunpack.c.h.bf16 %v2752_v52  ;;  %v1133_v52 = vld [vmem:[#allocation17 + $0x80] sm:$0xff]  ;;  %v1166_v16 = vunpack.c.h.bf16 %v1125_v10  ;;  %v1123_v18 = vld [vmem:[#allocation17 + $0x30] sm:$0xff] }
 0x71d   :  { %v1075_v30 = vmul.f32 %v2732_v49, %v1074_v23  ;;  %v1059_v11 = vsel %vm1056_vm6, %v1058_v40, %v1054_v28  ;;  %v1039_v36 = vsel %vm1038_vm12, %v2779_v45, %v1035_v25  ;;  %v1208_v45 = vunpack.c.h.bf16 %v2755_v12  ;;  %v1134_v12 = vld [vmem:[#allocation17 + $0x88] sm:$0xff] }
 0x71e   :  { %v1060_v6 = vmul.f32 %v2722_v38, %v1059_v11  ;;  %v1044_v24 = vsel %vm1041_vm7, %v1043_v7, %v1039_v36  ;;  %v1200_v38 = vunpack.c.h.bf16 %v2767_v8  ;;  %v1181_v47 = vunpack.c.l.bf16 %v1133_v52  ;;  %v1131_v8 = vld [vmem:[#allocation17 + $0x70] sm:$0xff]  ;;  %v1122_v7 = vld [vmem:[#allocation17 + $0x28] sm:$0xff] }
 0x71f   :  { %v1078_v39 = vmul.f32 %v1075_v30, %v2704_v59  ;;  %v1045_v33 = vmul.f32 %v2724_v44, %v1044_v24  ;;  %v1204_v59 = vunpack.c.h.bf16 %v2759_v35  ;;  %v1188_v44 = vunpack.c.h.bf16 %v1136_v13  ;;  %v1126_v13 = vld [vmem:[#allocation17 + $0x48] sm:$0xff]  ;;  %v1119_v36 = vld [vmem:[#allocation17 + $0x10] sm:$0xff] }
 0x720   :  { %v1077_v9 = vmul.f32 %v1060_v6, %v2701_v50  ;;  %v1196_v50 = vunpack.c.h.bf16 %v2783_v53  ;;  %v1182_v35 = vunpack.c.h.bf16 %v1133_v52  ;;  %v1183_v48 = vunpack.c.l.bf16 %v1134_v12  ;;  %1235 = vmatpush.msrb.mxu1 %v1181_v47  ;;  %v1120_v6 = vld [vmem:[#allocation17 + $0x18] sm:$0xff]  ;;  %v1325_v47 = vld [vmem:[#allocation19 + $0x28] sm:$0xff] }
 0x721   :  { %1095 = vmatpush.msrb.mxu2 %v1078_v39  ;;  %v1076_v49 = vmul.f32 %v1045_v33, %v2698_v37  ;;  %v1192_v37 = vunpack.c.h.bf16 %v2790_v0  ;;  %v1184_v51 = vunpack.c.h.bf16 %v1134_v12  ;;  %v1177_v53 = vunpack.c.l.bf16 %v1131_v8  ;;  %v1327_v52 = vld [vmem:[#allocation19 + $0x38] sm:$0xff]  ;;  %v1326_v12 = vld [vmem:[#allocation19 + $0x30] sm:$0xff] }
 0x722   :  { %1258 = vmatpush.msrb.mxu0 %v1182_v35  ;;  %v1178_v55 = vunpack.c.h.bf16 %v1131_v8  ;;  %1281 = vmatpush.msrb.mxu3 %v1183_v48  ;;  %v1176_v0 = vunpack.c.h.bf16 %v1130_v60  ;;  %v1167_v43 = vunpack.c.l.bf16 %v1126_v13  ;;  %v1168_v17 = vunpack.c.h.bf16 %v1126_v13 }
 0x723   :  { %1096 = vmatpush.msrb.mxu2 %v1077_v9  ;;  %1236 = vmatpush.msrb.mxu1 %v1177_v53  ;;  %v1161_v20 = vunpack.c.l.bf16 %v1123_v18  ;;  %v1162_v22 = vunpack.c.h.bf16 %v1123_v18  ;;  %v1163_v40 = vunpack.c.l.bf16 %v1124_v19  ;;  %v1164_v25 = vunpack.c.h.bf16 %v1124_v19 }
 0x724   :  { %1259 = vmatpush.msrb.mxu0 %v1178_v55  ;;  %1282 = vmatpush.msrb.mxu3 %v1179_v56  ;;  %v1157_v23 = vunpack.c.l.bf16 %v1121_v26  ;;  %v1158_v28 = vunpack.c.h.bf16 %v1121_v26  ;;  %v1159_v30 = vunpack.c.l.bf16 %v1122_v7  ;;  %v1160_v11 = vunpack.c.h.bf16 %v1122_v7 }
 0x725   :  { %1097 = vmatpush.msrb.mxu2 %v1076_v49  ;;  %1237 = vmatpush.msrb.mxu1 %v1173_v61  ;;  %v1153_v24 = vunpack.c.l.bf16 %v1119_v36  ;;  %v1154_v39 = vunpack.c.h.bf16 %v1119_v36  ;;  %v1155_v33 = vunpack.c.l.bf16 %v1120_v6  ;;  %v1156_v9 = vunpack.c.h.bf16 %v1120_v6  ;;  %v1117_v49 = vld [vmem:[#allocation17] sm:$0xff] }
 0x726   :  { %1845 = vmatmul.msk.f32.vlgmr.msrb.gmra.mxu2 %vm697_vm13, %v2657_v14  ;;  %1260 = vmatpush.msrb.mxu0 %v1174_v62  ;;  %v1342_v35 = vunpack.c.l.bf16 %v1327_v52  ;;  %v1343_v48 = vunpack.c.h.bf16 %v1327_v52  ;;  %v1341_v8 = vunpack.c.h.bf16 %v1326_v12  ;;  %v1338_v55 = vunpack.c.l.bf16 %v1325_v47  ;;  %v1322_v62 = vld [vmem:[#allocation19 + $0x10] sm:$0xff]  ;;  %v1213_v36 = vld [vmem:[%s2991_s21] sm:$0xf] }
 0x727   :  { %1297 = vmatpush.msra.mxu2 %v1212_v46  ;;  %1283 = vmatpush.msrb.mxu3 %v1175_v63  ;;  %v1118_v46 = vld [vmem:[#allocation17 + $0x8] sm:$0xff]  ;;  %v1339_v56 = vunpack.c.h.bf16 %v1325_v47  ;;  %v1337_v60 = vunpack.c.h.bf16 %v1324_v54  ;;  %v1330_v13 = vunpack.c.l.bf16 %v1321_v2  ;;  %v1214_v6 = vunpack.c.l.bf16 %v1213_v36 }
 0x728   :  { %1238 = vmatpush.msrb.mxu1 %v1169_v3  ;;  %1261 = vmatpush.msrb.mxu0 %v1170_v4  ;;  %v1332_v4 = vunpack.c.l.bf16 %v1322_v62 }
 0x729   :  { %1298 = vmatpush.msra.mxu2 %v1208_v45  ;;  %1284 = vmatpush.msrb.mxu3 %v1171_v5  ;;  %v1149_v45 = vunpack.c.l.bf16 %v1117_v49  ;;  %v1333_v5 = vunpack.c.h.bf16 %v1322_v62  ;;  %v1218_v52 = vperm.slane %v1214_v6, 4 }
 0x72a   :  { %1239 = vmatpush.msrb.mxu1 %v1165_v42  ;;  %1262 = vmatpush.msrb.mxu0 %v1166_v16  ;;  %v1331_v42 = vunpack.c.h.bf16 %v1321_v2 }
 0x72b   :  { %1299 = vmatpush.msra.mxu2 %v1204_v59  ;;  %1285 = vmatpush.msrb.mxu3 %v1167_v43  ;;  %v1150_v59 = vunpack.c.h.bf16 %v1117_v49 }
 0x72c   :  { %1240 = vmatpush.msrb.mxu1 %v1161_v20  ;;  %1263 = vmatpush.msrb.mxu0 %v1162_v22 }
 0x72d   :  { %1300 = vmatpush.msra.mxu2 %v1200_v38  ;;  %1286 = vmatpush.msrb.mxu3 %v1163_v40  ;;  %v1151_v38 = vunpack.c.l.bf16 %v1118_v46 }
 0x72e   :  { %1846 = vmatmul.msk.f32.gmra.mxu2 %vm697_vm13, %v2665_v15  ;;  %1241 = vmatpush.msrb.mxu1 %v1157_v23 }
 0x72f   :  { %1301 = vmatpush.msra.mxu2 %v1196_v50  ;;  %1264 = vmatpush.msrb.mxu0 %v1158_v28  ;;  %v1152_v50 = vunpack.c.h.bf16 %v1118_v46  ;;  %v2003_v28 = vld [vmem:[#allocation2] sm:$0xff] }
 0x730   :  { %1287 = vmatpush.msrb.mxu3 %v1159_v30  ;;  %1242 = vmatpush.msrb.mxu1 %v1153_v24  ;;  %v2004_v30 = vld [vmem:[#allocation2 + $0x8] sm:$0xff] }
 0x731   :  { %1302 = vmatpush.msra.mxu2 %v1192_v37  ;;  %1265 = vmatpush.msrb.mxu0 %v1154_v39  ;;  %v1079_v37 = vld [vmem:[%s2989_s19] sm:$0x1] }
 0x732   :  { %1288 = vmatpush.msrb.mxu3 %v1155_v33  ;;  %1243 = vmatpush.msrb.mxu1 %v1149_v45  ;;  %v1216_v33 = vperm.slane %v1214_v6, 0 }
 0x733   :  { %1303 = vmatpush.msra.mxu2 %v1188_v44  ;;  %1266 = vmatpush.msrb.mxu0 %v1150_v59  ;;  %v1080_v44 = vunpack.c.l.bf16 %v1079_v37 }
 0x734   :  { %1289 = vmatpush.msrb.mxu3 %v1151_v38  ;;  %1352 = vmatpush.msra.mxu1 %v1342_v35  ;;  %v1224_v49 = vperm.slane %v1216_v33, 0 }
 0x735   :  { %1304 = vmatpush.msra.mxu2 %v1184_v51  ;;  %v1340_v51 = vunpack.c.l.bf16 %v1326_v12  ;;  %v1081_v53 = vperm.slane %v1080_v44, 0  ;;  %1378 = vmatpush.msra.mxu0 %v1343_v48  ;;  %v1219_v12 = vperm.slane %v1214_v6, 6  ;;  %v1226_v48 = vperm.slane %v1218_v52, 0 }
 0x737   :  { %1305 = vmatpush.msra.mxu2 %v1180_v57  ;;  %v1323_v57 = vld [vmem:[#allocation19 + $0x18] sm:$0xff]  ;;  %1353 = vmatpush.msra.mxu1 %v1340_v51  ;;  %v1227_v51 = vperm.slane %v1219_v12, 0 }
 0x738   :  { %1379 = vmatpush.msra.mxu0 %v1341_v8  ;;  %v1335_v1 = vunpack.c.h.bf16 %v1323_v57 }
 0x739   :  { %1306 = vmatpush.msra.mxu2 %v1176_v0  ;;  %1354 = vmatpush.msra.mxu1 %v1338_v55  ;;  %v1334_v0 = vunpack.c.l.bf16 %v1323_v57 }
 0x73a   :  { %1380 = vmatpush.msra.mxu0 %v1339_v56 }
 0x73b   :  { %1307 = vmatpush.msra.mxu2 %v1172_v41  ;;  %1355 = vmatpush.msra.mxu1 %v1336_v58  ;;  %v1320_v41 = vld [vmem:[#allocation19] sm:$0xff] }
 0x73c   :  { %1381 = vmatpush.msra.mxu0 %v1337_v60  ;;  %v1328_v16 = vunpack.c.l.bf16 %v1320_v41  ;;  %v1329_v43 = vunpack.c.h.bf16 %v1320_v41 }
 0x73d   :  { %1308 = vmatpush.msra.mxu2 %v1168_v17  ;;  %1356 = vmatpush.msra.mxu1 %v1334_v0 }
 0x73e   :  { %1382 = vmatpush.msra.mxu0 %v1335_v1 }
 0x73f   :  { %1309 = vmatpush.msra.mxu2 %v1164_v25  ;;  %1357 = vmatpush.msra.mxu1 %v1332_v4 }
 0x740   :  { %1383 = vmatpush.msra.mxu0 %v1333_v5 }
 0x741   :  { %1310 = vmatpush.msra.mxu2 %v1160_v11  ;;  %1358 = vmatpush.msra.mxu1 %v1330_v13  ;;  %v2005_v11 = vld [vmem:[#allocation2 + $0x10] sm:$0xff] }
 0x742   :  { %1384 = vmatpush.msra.mxu0 %v1331_v42 }
 0x743   :  { %1311 = vmatpush.msra.mxu2 %v1156_v9  ;;  %1359 = vmatpush.msra.mxu1 %v1328_v16  ;;  %v1217_v9 = vperm.slane %v1214_v6, 2 }
 0x744   :  { %1385 = vmatpush.msra.mxu0 %v1329_v43 }
 0x745   :  { %1312 = vmatpush.msra.mxu2 %v1152_v50  ;;  %v1225_v46 = vperm.slane %v1217_v9, 0 }
 0x7a9   :  { %v1099_v61 = vpop.f32.mrf.mxu2 }
 0x7aa   :  { %v1100_v63 = vadd.f32 %v1099_v61, %v1081_v53 }
 0x7ac   :  { %v1107_v3 = vmin.f32 %v1100_v63, 0.0  ;;  %vm1105_vm11 = vcmp.gt.f32.partialorder %v1100_v63, 0.0 }
 0x7ae   :  { %v1109_v10 = vmul.f32 1.442695, %v1107_v3 }
 0x7b0   :  { %1987 = vpow2.f32 %v1109_v10 }
 0x7b1   :  { %v1102_v17 = vpop.f32.mrf.mxu2 }
 0x7b2   :  { %v1103_v18 = vadd.f32 %v1102_v17, %v1081_v53 }
 0x7b4   :  { %v1108_v19 = vmin.f32 %v1103_v18, 0.0  ;;  %vm1106_vm14 = vcmp.gt.f32.partialorder %v1103_v18, 0.0 }
 0x7b6   :  { %v1988_v20 = vpop.eup %1987  ;;  %v1111_v22 = vmul.f32 1.442695, %v1108_v19 }
 0x7b7   :  { %v1847_v40 = vadd.f32 -1.0, %v1988_v20 }
 0x7b8   :  { %1989 = vpow2.f32 %v1111_v22 }
 0x7b9   :  { %v1115_v25 = vsel %vm1105_vm11, %v1100_v63, %v1847_v40  ;;  %v1542_v63 = vld [vmem:[%s2993_s23] sm:$0x3] }
 0x7ba   :  { %1244 = vmatmul.f32.vlgmr.msrb.gmra.mxu1 %v1115_v25  ;;  %1267 = vmatmul.f32.vlgmr.msrb.gmra.mxu0 %v1115_v25  ;;  %v1543_v0 = vunpack.c.l.bf16 %v1542_v63 }
 0x7bb   :  { %1290 = vmatmul.f32.vlgmr.msrb.gmra.mxu3 %v1115_v25  ;;  %1313 = vmatmul.f32.vlgmr.msra.gmra.mxu2 %v1115_v25 }
 0x7bc   :  { %v1545_v4 = vperm.slane %v1543_v0, 0  ;;  %v1546_v5 = vperm.slane %v1543_v0, 2 }
 0x7be   :  { %v1990_v26 = vpop.eup %1989  ;;  %v1549_v16 = vperm.slane %v1545_v4, 0  ;;  %v1550_v43 = vperm.slane %v1546_v5, 0 }
 0x7bf   :  { %v1848_v7 = vadd.f32 -1.0, %v1990_v26 }
 0x7c1   :  { %v1116_v23 = vsel %vm1106_vm14, %v1103_v18, %v1848_v7 }
 0x7c2   :  { %1247 = vmatmul.f32.gmra.mxu1 %v1116_v23  ;;  %1270 = vmatmul.f32.gmra.mxu0 %v1116_v23 }
 0x7c3   :  { %1293 = vmatmul.f32.gmra.mxu3 %v1116_v23  ;;  %1316 = vmatmul.f32.gmra.mxu2 %v1116_v23 }
 0x7ca   :  { %1849 = vmatmul.msk.f32.vlgmr.msra.gmra.mxu1 %vm372_vm2, %v2003_v28  ;;  %1852 = vmatmul.msk.f32.vlgmr.msra.gmra.mxu0 %vm372_vm2, %v2003_v28 }
 0x7d2   :  { %1850 = vmatmul.msk.f32.gmra.mxu1 %vm372_vm2, %v2004_v30  ;;  %1853 = vmatmul.msk.f32.gmra.mxu0 %vm372_vm2, %v2004_v30 }
 0x7da   :  { %1851 = vmatmul.msk.f32.gmra.mxu1 %vm372_vm2, %v2005_v11  ;;  %1854 = vmatmul.msk.f32.gmra.mxu0 %vm372_vm2, %v2005_v11 }
 0x837   :  { %v1245_v24 = vpop.f32.mrf.mxu1  ;;  %v1268_v39 = vpop.f32.mrf.mxu0 }
 0x838   :  { %v1246_v47 = vadd.f32 %v1245_v24, %v1224_v49  ;;  %v1269_v35 = vadd.f32 %v1268_v39, %v1225_v46 }
 0x83e   :  { %v1291_v45 = vpop.f32.mrf.mxu3  ;;  %v1314_v59 = vpop.f32.mrf.mxu2 }
 0x83f   :  { %v1248_v38 = vpop.f32.mrf.mxu1  ;;  %v1271_v50 = vpop.f32.mrf.mxu0  ;;  %v1292_v56 = vadd.f32 %v1291_v45, %v1226_v48  ;;  %v1315_v57 = vadd.f32 %v1314_v59, %v1227_v51 }
 0x840   :  { %v1249_v37 = vadd.f32 %v1248_v38, %v1224_v49  ;;  %v1272_v44 = vadd.f32 %v1271_v50, %v1225_v46 }
 0x842   :  { %1855 = vmatpush.msk.msra.mxu3 %vm486_vm3, %v1249_v37  ;;  %1859 = vmatpush.msk.msrb.mxu2 %vm486_vm3, %v1272_v44 }
 0x844   :  { %1417 = vmatpush.msra.mxu3 %v1246_v47  ;;  %1443 = vmatpush.msrb.mxu2 %v1269_v35 }
 0x845   :  { %1856 = vmatmul.msk.f32.vlgmr.msra.gmra.mxu3 %vm476_vm4, %v2557_v21  ;;  %1860 = vmatmul.msk.f32.vlgmr.msrb.gmra.mxu2 %vm476_vm4, %v2557_v21 }
 0x846   :  { %v1294_v8 = vpop.f32.mrf.mxu3  ;;  %v1317_v54 = vpop.f32.mrf.mxu2 }
 0x847   :  { %v1295_v53 = vadd.f32 %v1294_v8, %v1226_v48  ;;  %v1318_v55 = vadd.f32 %v1317_v54, %v1227_v51  ;;  %v1361_v21 = vpop.f32.mrf.mxu1 }
 0x849   :  { %1863 = vmatpush.msk.msrb.mxu1 %vm486_vm3, %v1295_v53  ;;  %1867 = vmatpush.msk.msrb.mxu0 %vm486_vm3, %v1318_v55 }
 0x84b   :  { %1475 = vmatpush.msrb.mxu1 %v1292_v56  ;;  %1501 = vmatpush.msrb.mxu0 %v1315_v57 }
 0x84c   :  { %1864 = vmatmul.msk.f32.vlgmr.msrb.gmra.mxu1 %vm476_vm4, %v2565_v27  ;;  %1868 = vmatmul.msk.f32.vlgmr.msrb.gmra.mxu0 %vm476_vm4, %v2565_v27 }
 0x84d   :  { %1857 = vmatmul.msk.f32.gmra.mxu3 %vm476_vm4, %v2568_v29  ;;  %1861 = vmatmul.msk.f32.gmra.mxu2 %vm476_vm4, %v2568_v29  ;;  %v1387_v29 = vpop.f32.mrf.mxu0 }
 0x84f   :  { %v1364_v58 = vpop.f32.mrf.mxu1 }
 0x854   :  { %1865 = vmatmul.msk.f32.gmra.mxu1 %vm476_vm4, %v2577_v31  ;;  %1869 = vmatmul.msk.f32.gmra.mxu0 %vm476_vm4, %v2577_v31 }
 0x855   :  { %1858 = vmatmul.msk.f32.gmra.mxu3 %vm476_vm4, %v2579_v32  ;;  %1862 = vmatmul.msk.f32.gmra.mxu2 %vm476_vm4, %v2579_v32  ;;  %v1390_v60 = vpop.f32.mrf.mxu0 }
 0x857   :  { %v1367_v61 = vpop.f32.mrf.mxu1 }
 0x85c   :  { %1866 = vmatmul.msk.f32.gmra.mxu1 %vm476_vm4, %v2588_v34  ;;  %1870 = vmatmul.msk.f32.gmra.mxu0 %vm476_vm4, %v2588_v34 }
 0x85d   :  { %v1393_v62 = vpop.f32.mrf.mxu0 }
 0x8c8   :  { %v2886_v1 = vpop.f32.mrf.mxu3  ;;  %v2888_v32 = vpop.f32.mrf.mxu2 }
 0x8c9   :  { %v1477_v2 = vpop.f32.mrf.mxu1  ;;  %v1503_v3 = vpop.f32.mrf.mxu0 }
 0x8ca   :  { %v1512_v41 = vadd.f32 %v1477_v2, %v2886_v1  ;;  %v1513_v10 = vadd.f32 %v1503_v3, %v2888_v32 }
 0x8cc   :  { %v1518_v13 = vadd.f32 %v1512_v41, %v1361_v21  ;;  %v1519_v42 = vadd.f32 %v1513_v10, %v1387_v29 }
 0x8ce   :  { %v1530_v17 = vmul.f32 0.2, %v1518_v13  ;;  %v1531_v18 = vmul.f32 0.2, %v1519_v42  ;;  %vm1524_vm2 = vcmp.gt.f32.partialorder %v1518_v13, 0.0  ;;  %vm1525_vm15 = vcmp.gt.f32.partialorder %v1519_v42, 0.0 }
 0x8d0   :  { %v2892_v19 = vpop.f32.mrf.mxu3  ;;  %v2894_v20 = vpop.f32.mrf.mxu2  ;;  %v1536_v22 = vsel %vm1524_vm2, %v1518_v13, %v1530_v17  ;;  %v1537_v40 = vsel %vm1525_vm15, %v1519_v42, %v1531_v18 }
 0x8d1   :  { %v1480_v25 = vpop.f32.mrf.mxu1  ;;  %v1506_v26 = vpop.f32.mrf.mxu0  ;;  %v1551_v7 = vmul.f32 %v1549_v16, %v1536_v22  ;;  %v1552_v23 = vmul.f32 %v1550_v43, %v1537_v40 }
 0x8d2   :  { %v1514_v28 = vadd.f32 %v1480_v25, %v2892_v19  ;;  %v1515_v30 = vadd.f32 %v1506_v26, %v2894_v20 }
 0x8d3   :  { %v1557_v11 = vadd.f32 %v1552_v23, %v1551_v7 }
 0x8d4   :  { %v1520_v36 = vadd.f32 %v1514_v28, %v1364_v58  ;;  %v1521_v6 = vadd.f32 %v1515_v30, %v1390_v60 }
 0x8d5   :  { %1558 = vadd.xlane.f32.xlu1 %v1557_v11 }
 0x8d6   :  { %v1532_v24 = vmul.f32 0.2, %v1520_v36  ;;  %v1533_v39 = vmul.f32 0.2, %v1521_v6  ;;  %vm1526_vm0 = vcmp.gt.f32.partialorder %v1520_v36, 0.0  ;;  %vm1527_vm1 = vcmp.gt.f32.partialorder %v1521_v6, 0.0 }
 0x8d8   :  { %v2898_v33 = vpop.f32.mrf.mxu3  ;;  %v2900_v9 = vpop.f32.mrf.mxu2  ;;  %v1538_v49 = vsel %vm1526_vm0, %v1520_v36, %v1532_v24  ;;  %v1539_v46 = vsel %vm1527_vm1, %v1521_v6, %v1533_v39 }
 0x8d9   :  { %v1483_v45 = vpop.f32.mrf.mxu1  ;;  %v1509_v59 = vpop.f32.mrf.mxu0  ;;  %v1553_v38 = vmul.f32 %v1549_v16, %v1538_v49  ;;  %v1554_v50 = vmul.f32 %v1550_v43, %v1539_v46 }
 0x8da   :  { %v1516_v37 = vadd.f32 %v1483_v45, %v2898_v33  ;;  %v1517_v44 = vadd.f32 %v1509_v59, %v2900_v9 }
 0x8db   :  { %v1560_v52 = vadd.f32 %v1554_v50, %v1553_v38 }
 0x8dc   :  { %v1522_v12 = vadd.f32 %v1516_v37, %v1367_v61  ;;  %v1523_v47 = vadd.f32 %v1517_v44, %v1393_v62 }
 0x8dd   :  { %1561 = vadd.xlane.f32.xlu2 %v1560_v52 }
 0x8de   :  { %v1534_v35 = vmul.f32 0.2, %v1522_v12  ;;  %v1535_v48 = vmul.f32 0.2, %v1523_v47  ;;  %vm1528_vm5 = vcmp.gt.f32.partialorder %v1522_v12, 0.0  ;;  %vm1529_vm6 = vcmp.gt.f32.partialorder %v1523_v47, 0.0 }
 0x8e0   :  { %v1540_v51 = vsel %vm1528_vm5, %v1522_v12, %v1534_v35  ;;  %v1541_v8 = vsel %vm1529_vm6, %v1523_v47, %v1535_v48 }
 0x8e1   :  { %v1555_v54 = vmul.f32 %v1549_v16, %v1540_v51  ;;  %v1556_v53 = vmul.f32 %v1550_v43, %v1541_v8 }
 0x8e3   :  { %v1563_v55 = vadd.f32 %v1556_v53, %v1555_v54 }
 0x8e5   :  { %1564 = vadd.xlane.f32.xlu0 %v1563_v55 }
 0x948   :  { %v1559_v57 = vpop.xlane.xlu1 %1558 }
 0x949   :  { %v1566_v29 = vsel %vm581_vm9, %v1559_v57, -1e+30 }
 0x94a   :  { %v1569_v60 = vsel %vm476_vm4, %v1566_v29, -inf }
 0x950   :  { %v1562_v56 = vpop.xlane.xlu2 %1561 }
 0x951   :  { %v1567_v21 = vsel %vm582_vm8, %v1562_v56, -1e+30 }
 0x952   :  { %v1570_v58 = vsel %vm476_vm4, %v1567_v21, -inf }
 0x953   :  { %v1572_v62 = vmax.f32 %v1569_v60, %v1570_v58 }
 0x958   :  { %v1565_v61 = vpop.xlane.xlu0 %1564 }
 0x959   :  { %v1568_v63 = vsel %vm583_vm10, %v1565_v61, -1e+30 }
 0x95a   :  { %v1571_v0 = vsel %vm476_vm4, %v1568_v63, -inf }
 0x95b   :  { %v1573_v2 = vmax.f32 %v1572_v62, %v1571_v0 }
 0x95d   :  { %v1574_v3 = vrot.slane %v1573_v2, 4 }
 0x95f   :  { %v1575_v4 = vmax.f32 %v1573_v2, %v1574_v3 }
 0x961   :  { %v1576_v5 = vrot.slane %v1575_v4, 2 }
 0x963   :  { %v1577_v41 = vmax.f32 %v1575_v4, %v1576_v5 }
 0x965   :  { %v1578_v10 = vrot.slane %v1577_v41, 1 }
 0x967   :  { %v1579_v13 = vmax.f32 %v1577_v41, %v1578_v10 }
 0x969   :  { %v1582_v42 = vmul.f32 %v1579_v13, %v2588_v34  ;;  %v1581_v16 = vmul.f32 %v2577_v31, %v1579_v13  ;;  %v1580_v43 = vmul.f32 %v2565_v27, %v1579_v13 }
 0x96b   :  { %v1589_v17 = vsel %vm476_vm4, %v1582_v42, 0.0  ;;  %v1586_v18 = vsel %vm476_vm4, %v1581_v16, 0.0  ;;  %v1583_v22 = vsel %vm476_vm4, %v1580_v43, 0.0 }
 0x96c   :  { %1590 = vadd.xlane.f32.xlu0 %v1589_v17  ;;  %1587 = vadd.xlane.f32.xlu2 %v1586_v18 }
 0x96d   :  { %1584 = vadd.xlane.f32.xlu1 %v1583_v22 }
 0x9df   :  { %v1591_v40 = vpop.xlane.xlu0 %1590  ;;  %v1588_v25 = vpop.xlane.xlu2 %1587 }
 0x9e0   :  { %v1594_v26 = vsub.f32 %v1565_v61, %v1591_v40  ;;  %v1593_v7 = vsub.f32 %v1562_v56, %v1588_v25  ;;  %v1585_v23 = vpop.xlane.xlu1 %1584 }
 0x9e1   :  { %v1592_v28 = vsub.f32 %v1559_v57, %v1585_v23 }
 0x9e2   :  { %v1599_v30 = vmul.f32 1.442695, %v1594_v26  ;;  %v1597_v11 = vmul.f32 1.442695, %v1593_v7 }
 0x9e3   :  { %v1595_v36 = vmul.f32 1.442695, %v1592_v28 }
 0x9e4   :  { %1991 = vpow2.f32 %v1599_v30 }
 0x9e5   :  { %1993 = vpow2.f32 %v1597_v11 }
 0x9e6   :  { %1995 = vpow2.f32 %v1595_v36 }
 0x9ea   :  { %v2919_v6 = vpop.eup %1991 }
 0x9eb   :  { %v2921_v24 = vpop.eup %1993  ;;  %v1603_v46 = vmul.f32 %v2919_v6, %v2588_v34 }
 0x9ec   :  { %v2923_v39 = vpop.eup %1995  ;;  %v1602_v49 = vmul.f32 %v2921_v24, %v2577_v31 }
 0x9ed   :  { %v1601_v45 = vmul.f32 %v2923_v39, %v2565_v27  ;;  %v1607_v37 = vsel %vm476_vm4, %v1603_v46, 0.0 }
 0x9ee   :  { %v1605_v59 = vsel %vm476_vm4, %v1602_v49, 0.0 }
 0x9ef   :  { %v1604_v38 = vsel %vm476_vm4, %v1601_v45, 0.0 }
 0x9f0   :  { %v1606_v50 = vadd.f32 %v1605_v59, %v1604_v38 }
 0x9f2   :  { %v1608_v44 = vadd.f32 %v1607_v37, %v1606_v50 }
 0x9f4   :  { %v1609_v52 = vrot.slane %v1608_v44, 4 }
 0x9f6   :  { %v1610_v12 = vadd.f32 %v1609_v52, %v1608_v44 }
 0x9f8   :  { %v1611_v47 = vrot.slane %v1610_v12, 2 }
 0x9fa   :  { %v1612_v35 = vadd.f32 %v1611_v47, %v1610_v12 }
 0x9fc   :  { %v1613_v48 = vrot.slane %v1612_v35, 1 }
 0x9fe   :  { %v1614_v51 = vadd.f32 %v1613_v48, %v1612_v35 }
 0xa00   :  { %v1615_v8 = vadd.f32 1e-16, %v1614_v51 }
 0xa02   :  { %v1618_v54 = vmul.f32 %v1615_v8, %v2588_v34  ;;  %v1617_v53 = vmul.f32 %v2577_v31, %v1615_v8  ;;  %v1616_v55 = vmul.f32 %v2565_v27, %v1615_v8 }
 0xa04   :  { %v1625_v56 = vsel %vm476_vm4, %v1618_v54, 0.0  ;;  %v1622_v57 = vsel %vm476_vm4, %v1617_v53, 0.0  ;;  %v1619_v21 = vsel %vm476_vm4, %v1616_v55, 0.0 }
 0xa05   :  { %1626 = vadd.xlane.f32.xlu1 %v1625_v56  ;;  %1623 = vadd.xlane.f32.xlu2 %v1622_v57 }
 0xa06   :  { %1620 = vadd.xlane.f32.xlu0 %v1619_v21 }
 0xa78   :  { %v1627_v29 = vpop.xlane.xlu1 %1626  ;;  %v1624_v58 = vpop.xlane.xlu2 %1623 }
 0xa79   :  { %1997 = vrcp.f32 %v1627_v29  ;;  %v1621_v60 = vpop.xlane.xlu0 %1620  ;;  %vm1663_vm8 = vweird.f32 %v1627_v29  ;;  %v1667_v2 = vand.u32 2147483647, %v1627_v29  ;;  %v1669_v3 = vand.u32 2147483648, %v1627_v29 }
 0xa7a   :  { %1999 = vrcp.f32 %v1624_v58  ;;  %v1654_v41 = vand.u32 2147483648, %v1624_v58  ;;  %v1652_v42 = vand.u32 2147483647, %v1624_v58  ;;  %v1639_v16 = vand.u32 2147483648, %v1621_v60 }
 0xa7b   :  { %2001 = vrcp.f32 %v1621_v60  ;;  %v1637_v18 = vand.u32 2147483647, %v1621_v60  ;;  %vm1668_vm11 = vcmp.eq.f32.partialorder %v1667_v2, 8.507059e+37  ;;  %v1670_v22 = vor.u32 1.1754944e-38, %v1669_v3 }
 0xa7c   :  { %vm1648_vm14 = vweird.f32 %v1624_v58  ;;  %v1655_v26 = vor.u32 1.1754944e-38, %v1654_v41  ;;  %vm1633_vm15 = vweird.f32 %v1621_v60  ;;  %vm1653_vm0 = vcmp.eq.f32.partialorder %v1652_v42, 8.507059e+37 }
 0xa7d   :  { %v1640_v30 = vor.u32 1.1754944e-38, %v1639_v16  ;;  %vm1638_vm5 = vcmp.eq.f32.partialorder %v1637_v18, 8.507059e+37 }
 0xa7f   :  { %v1998_v34 = vpop.eup %1997 }
 0xa80   :  { %v2000_v61 = vpop.eup %1999  ;;  %v1659_v31 = vmul.f32 %v1998_v34, %v1627_v29  ;;  %vm1664_vm9 = vweird.f32 %v1998_v34 }
 0xa81   :  { %v2002_v62 = vpop.eup %2001  ;;  %v1644_v27 = vmul.f32 %v2000_v61, %v1624_v58  ;;  %vm1649_vm10 = vweird.f32 %v2000_v61  ;;  %vm1665_vm7 = vmor %vm1663_vm8, %vm1664_vm9 }
 0xa82   :  { %v1660_v63 = vsub.f32 1.0, %v1659_v31  ;;  %v1629_v0 = vmul.f32 %v2002_v62, %v1621_v60  ;;  %vm1634_vm12 = vweird.f32 %v2002_v62  ;;  %vm1650_vm2 = vmor %vm1648_vm14, %vm1649_vm10 }
 0xa83   :  { %v1645_v4 = vsub.f32 1.0, %v1644_v27  ;;  %vm1635_vm1 = vmor %vm1633_vm15, %vm1634_vm12 }
 0xa84   :  { %v1661_v5 = vmul.f32 %v1998_v34, %v1660_v63  ;;  %v1630_v10 = vsub.f32 1.0, %v1629_v0 }
 0xa85   :  { %v1646_v13 = vmul.f32 %v2000_v61, %v1645_v4 }
 0xa86   :  { %v1662_v43 = vadd.f32 %v1998_v34, %v1661_v5  ;;  %v1631_v17 = vmul.f32 %v2002_v62, %v1630_v10 }
 0xa87   :  { %v1647_v40 = vadd.f32 %v2000_v61, %v1646_v13 }
 0xa88   :  { %v1666_v25 = vsel %vm1665_vm7, %v1998_v34, %v1662_v43  ;;  %v1632_v7 = vadd.f32 %v2002_v62, %v1631_v17 }
 0xa89   :  { %v1671_v23 = vsel %vm1668_vm11, %v1670_v22, %v1666_v25  ;;  %v1651_v28 = vsel %vm1650_vm2, %v2000_v61, %v1647_v40 }
 0xa8a   :  { %v1636_v11 = vsel %vm1635_vm1, %v2002_v62, %v1632_v7  ;;  %v1672_v36 = vmul.f32 %v2919_v6, %v1671_v23  ;;  %v1656_v49 = vsel %vm1653_vm0, %v1655_v26, %v1651_v28 }
 0xa8b   :  { %v1657_v46 = vmul.f32 %v2921_v24, %v1656_v49  ;;  %v1641_v45 = vsel %vm1638_vm5, %v1640_v30, %v1636_v11 }
 0xa8c   :  { %v1677_v59 = vmul.f32 %v1672_v36, %v2898_v33  ;;  %v1678_v38 = vmul.f32 %v1672_v36, %v2900_v9  ;;  %v1642_v50 = vmul.f32 %v2923_v39, %v1641_v45 }
 0xa8d   :  { %v1675_v37 = vmul.f32 %v1657_v46, %v2892_v19  ;;  %v1676_v44 = vmul.f32 %v1657_v46, %v2894_v20 }
 0xa8e   :  { %1701 = vmatpush.msrb.mxu3 %v1677_v59  ;;  %1724 = vmatpush.msra.mxu2 %v1678_v38  ;;  %v1673_v6 = vmul.f32 %v1642_v50, %v2886_v1  ;;  %v1674_v52 = vmul.f32 %v1642_v50, %v2888_v32  ;;  %v1679_v1 = vld [vmem:[%s2994_s24] sm:$0x3]  ;;  %s2326_s24 = smov [#allocation20]  }
 0xa8f   :  { %v1680_v19 = vunpack.c.l.bf16 %v1679_v1  ;;  %s1795_s15 = sshll.u32 %s2326_s24, 4  ;;  %s1796_s15 = int_to_ptr.vmem [resolvable:$true] %s1795_s15 }
 0xa90   :  { %1702 = vmatpush.msrb.mxu3 %v1675_v37  ;;  %1725 = vmatpush.msra.mxu2 %v1676_v44 }
 0xa91   :  { %v1682_v33 = vperm.slane %v1680_v19, 0  ;;  %v1683_v9 = vperm.slane %v1680_v19, 2 }
 0xa92   :  { %1703 = vmatpush.msrb.mxu3 %v1673_v6  ;;  %1726 = vmatpush.msra.mxu2 %v1674_v52 }
 0xa93   :  { %1871 = vmatmul.msk.f32.vlgmr.msrb.gmra.mxu3 %vm697_vm13, %v2657_v14  ;;  %1873 = vmatmul.msk.f32.vlgmr.msra.gmra.mxu2 %vm697_vm13, %v2657_v14  ;;  %v1686_v24 = vperm.slane %v1682_v33, 0  ;;  %v1687_v39 = vperm.slane %v1683_v9, 0 }
 0xa9b   :  { %1872 = vmatmul.msk.f32.gmra.mxu3 %vm697_vm13, %v2665_v15  ;;  %1874 = vmatmul.msk.f32.gmra.mxu2 %vm697_vm13, %v2665_v15  ;;  %v1734_v15 = vld [vmem:[#allocation5] sm:$0x3] }
 0xb16   :  { %v1705_v32 = vpop.f32.mrf.mxu3  ;;  %v1728_v20 = vpop.f32.mrf.mxu2 }
 0xb17   :  { %v1706_v48 = vadd.f32 %v1705_v32, %v1686_v24  ;;  %v1729_v51 = vadd.f32 %v1728_v20, %v1687_v39 }
 0xb1e   :  { %v1708_v12 = vpop.f32.mrf.mxu3  ;;  %v1731_v47 = vpop.f32.mrf.mxu2 }
 0xb1f   :  { %v1709_v14 = vadd.f32 %v1708_v12, %v1686_v24  ;;  %v1732_v35 = vadd.f32 %v1731_v47, %v1687_v39 }
 0xb21   :  { %1875 = vmatpush.msk.msra.mxu1 %vm486_vm3, %v1709_v14  ;;  %1877 = vmatpush.msk.msra.mxu3 %vm486_vm3, %v1732_v35 }
 0xb23   :  { %1759 = vmatpush.msra.mxu1 %v1706_v48  ;;  %1779 = vmatpush.msra.mxu3 %v1729_v51 }
 0xb24   :  { %1878 = vmatmul.msk.f32.vlgmr.msra.gmra.mxu3 %vm476_vm4, %v1734_v15  ;;  %1876 = vmatmul.msk.f32.vlgmr.msra.gmra.mxu1 %vm476_vm4, %v1734_v15 }
 0xba1   :  { %v1761_v54 = vpop.f32.mrf.mxu1 }
 0xba7   :  { %v1781_v8 = vpop.f32.mrf.mxu3 }
 0xba8   :  { %v1786_v53 = vrot.slane %v1781_v8, 6 }
 0xbaa   :  { %v1787_v55 = vsel %vm486_vm3, %v1761_v54, %v1786_v53 }
 0xbab   :  { %1789 = vst [vmem:[#allocation20] sm:$0xf] %v1787_v55 }
 0xbac   :  { %1800 = dma.vmem_to_hbm [thread:$0]  %s1796_s15, 64, %s1798_s11, [#allocation4]  }
 0xbad   :  { %2306 = dma.done.wait [#allocation4], 64  }
 0xbae   :  { %2307 = vsyncadd [#allocation4], 4294967232 }
 0xbaf   :  { %1805 = vsyncpa [#allocation3], 1 }
 0xbb0   :  { %1806 = vsyncpa [#allocation6], 1 }
 0xbb1   :  { %1807 = vsyncpa [#allocation9], 1 }
 0xbb2   :  { %1808 = vsyncpa [#allocation12], 1 }
 0xbb3   :  { %1809 = vsyncpa [#allocation15], 1 }
 0xbb4   :  { %1810 = vsyncpa [#allocation18], 1 }
 0xbb5   :  { %1811 = vsyncpa [#allocation4], 1 }

</bundles_post_ra>
